<compile_context>
chip_gen: v7x
topology: tpu7x:2x2x1
jax: 0.10.0
libtpu: 0.0.40
codegen_flags: <defaults>
</compile_context>

<pallas_src>
import jax
import jax.numpy as jnp
from jax.experimental import pallas as pl
from jax.experimental.pallas import tpu as pltpu

_LANE = 128
_SUBLANE = 8
_TIME_UNROLL = 8


def _round_up(n, m):
    return ((n + m - 1) // m) * m


def _permute_gate_cols(w):
    """Reorder last-axis gate blocks from PyTorch [i, f, g, o] to [i, f, o, g]."""
    h4 = w.shape[-1]
    h = h4 // 4
    return jnp.concatenate(
        [w[..., 0 * h:1 * h], w[..., 1 * h:2 * h],
         w[..., 3 * h:4 * h], w[..., 2 * h:3 * h]], axis=-1)


# ----------------------------------------------------------------------------
# Kernel
# ----------------------------------------------------------------------------
def _make_fused_lstm_fc_kernel(num_layers, T, Bt, H, unroll):
    three_h = 3 * H
    four_h = 4 * H

    def make_step(cur_ref, nxt_ref, w_hh, w_ih_next, b_next):
        """One recurrence step; optionally fuses the next layer's projection."""

        def step(t, carry):
            h, c = carry
            row = pl.multiple_of(t * Bt, Bt)
            gates = cur_ref[pl.ds(row, Bt), :] + jnp.dot(
                h, w_hh, preferred_element_type=jnp.float32)
            # Columns are [i, f, o, g]: one sigmoid over the i/f/o slab,
            # tanh only on the g slab.
            sig = jax.nn.sigmoid(gates[:, :three_h])
            i_g = sig[:, 0 * H:1 * H]
            f_g = sig[:, 1 * H:2 * H]
            o_g = sig[:, 2 * H:3 * H]
            g_g = jnp.tanh(gates[:, three_h:four_h])
            c_new = f_g * c + i_g * g_g
            h_new = o_g * jnp.tanh(c_new)
            if w_ih_next is not None:
                # Fused next-layer input projection (hidden in idle MXU slots).
                nxt_ref[pl.ds(row, Bt), :] = (
                    jnp.dot(h_new, w_ih_next,
                            preferred_element_type=jnp.float32) + b_next)
            return h_new, c_new

        return step

    def kernel(*refs):
        x_ref = refs[0]                               # (T, Bt, I) time-major
        layer_refs = refs[1:1 + 3 * num_layers]       # (W_ih, W_hh, bias) x L
        fc_w_ref = refs[1 + 3 * num_layers]           # (H, C_pad)
        fc_b_ref = refs[2 + 3 * num_layers]           # (1, C_pad)
        o_ref = refs[3 + 3 * num_layers]              # (Bt, C_pad)
        gx_bufs = (refs[4 + 3 * num_layers],          # (T*Bt, 4H) ping
                   refs[5 + 3 * num_layers])          # (T*Bt, 4H) pong

        # Layer-0 input projection hoisted over all timesteps: one MXU pass,
        # bias added once.
        in_dim = x_ref.shape[-1]
        x2d = x_ref[...].reshape(T * Bt, in_dim)
        gx_bufs[0][...] = (
            jnp.dot(x2d, layer_refs[0][...], preferred_element_type=jnp.float32)
            + layer_refs[2][...])

        h_last = None
        for layer in range(num_layers):
            cur = gx_bufs[layer % 2]
            nxt = gx_bufs[(layer + 1) % 2]
            is_last = layer == num_layers - 1
            # Hoist all weight loads out of the step dependency chain.
            w_hh = layer_refs[3 * layer + 1][...]                    # (H, 4H)
            if is_last:
                w_ih_next = None
                b_next = None
            else:
                w_ih_next = layer_refs[3 * (layer + 1) + 0][...]     # (H, 4H)
                b_next = layer_refs[3 * (layer + 1) + 2][...]        # (1, 4H)

            step = make_step(cur, nxt, w_hh, w_ih_next, b_next)
            h0 = jnp.zeros((Bt, H), jnp.float32)
            c0 = jnp.zeros((Bt, H), jnp.float32)
            h_last, _ = jax.lax.fori_loop(0, T, step, (h0, c0), unroll=unroll)

        # Final Linear on h_{T-1} of the last layer (lane-padded classes).
        out = (jnp.dot(h_last, fc_w_ref[...],
                       preferred_element_type=jnp.float32) + fc_b_ref[...])
        o_ref[...] = out.astype(o_ref.dtype)

    return kernel


# ----------------------------------------------------------------------------
# Wrapper
# ----------------------------------------------------------------------------
def lstm_fc_pallas(x, params, *, batch_tile=None, unroll=_TIME_UNROLL):
    """x: (B, T, input_size) batch_first. Returns (B, num_classes) logits."""
    B, T, I = x.shape
    H = params["layers"][0][1].shape[1]      # w_hh: (4H, H)
    C = params["fc_w"].shape[0]
    num_layers = len(params["layers"])

    # Sublane-align the batch; choose a large batch tile (fills MXU rows) that
    # still lets v7x split tiles across its two TensorCores when B is big.
    B_pad = _round_up(B, _SUBLANE)
    if batch_tile is None:
        batch_tile = min(B_pad, 128)
    Bt = _round_up(batch_tile, _SUBLANE)
    B_pad = _round_up(B_pad, Bt)
    n_btiles = B_pad // Bt
    C_pad = _round_up(C, _LANE)

    xf = x.astype(jnp.float32)
    if B_pad != B:
        xf = jnp.pad(xf, ((0, B_pad - B), (0, 0), (0, 0)))
    x_tm = jnp.transpose(xf, (1, 0, 2))      # (T, B_pad, I) time-major

    args = [x_tm]
    in_specs = [pl.BlockSpec((T, Bt, I), lambda b: (0, b, 0))]
    vmem_spec = pl.BlockSpec(memory_space=pltpu.MemorySpace.VMEM)
    for (w_ih, w_hh, b_ih, b_hh) in params["layers"]:
        args.append(_permute_gate_cols(
            jnp.transpose(w_ih).astype(jnp.float32)))                 # (in, 4H)
        args.append(_permute_gate_cols(
            jnp.transpose(w_hh).astype(jnp.float32)))                 # (H, 4H)
        args.append(_permute_gate_cols(
            (b_ih + b_hh).astype(jnp.float32)[None, :]))              # (1, 4H)
        in_specs += [vmem_spec, vmem_spec, vmem_spec]

    fc_w = jnp.transpose(params["fc_w"]).astype(jnp.float32)          # (H, C)
    fc_b = params["fc_b"].astype(jnp.float32)[None, :]                # (1, C)
    if C_pad != C:
        fc_w = jnp.pad(fc_w, ((0, 0), (0, C_pad - C)))
        fc_b = jnp.pad(fc_b, ((0, 0), (0, C_pad - C)))
    args += [fc_w, fc_b]
    in_specs += [vmem_spec, vmem_spec]

    kernel = _make_fused_lstm_fc_kernel(num_layers, T, Bt, H,
                                        unroll=max(1, min(unroll, T)))

    out = pl.pallas_call(
        kernel,
        grid=(n_btiles,),
        in_specs=in_specs,
        out_specs=pl.BlockSpec((Bt, C_pad), lambda b: (b, 0)),
        out_shape=jax.ShapeDtypeStruct((B_pad, C_pad), jnp.float32),
        scratch_shapes=[
            pltpu.VMEM((T * Bt, 4 * H), jnp.float32),   # gate buffer (ping)
            pltpu.VMEM((T * Bt, 4 * H), jnp.float32),   # gate buffer (pong)
        ],
        compiler_params=pltpu.CompilerParams(
            dimension_semantics=("parallel",)),
    )(*args)
    return out[:B, :C]


@jax.jit
def lstm_forward_pallas(x, params):
    return lstm_fc_pallas(x, params)


# ----------------------------------------------------------------------------
# Parameter init (matches nn.LSTM / nn.Linear shapes, PyTorch gate order)
# ----------------------------------------------------------------------------
def init_params(key, num_classes, input_size, hidden_size, num_layers):
    params = {"layers": []}
    k = 1.0 / jnp.sqrt(hidden_size)
    for layer in range(num_layers):
        in_dim = input_size if layer == 0 else hidden_size
        key, k1, k2, k3, k4 = jax.random.split(key, 5)
        w_ih = jax.random.uniform(k1, (4 * hidden_size, in_dim),
                                  jnp.float32, -k, k)
        w_hh = jax.random.uniform(k2, (4 * hidden_size, hidden_size),
                                  jnp.float32, -k, k)
        b_ih = jax.random.uniform(k3, (4 * hidden_size,), jnp.float32, -k, k)
        b_hh = jax.random.uniform(k4, (4 * hidden_size,), jnp.float32, -k, k)
        params["layers"].append((w_ih, w_hh, b_ih, b_hh))
    key, k5, k6 = jax.random.split(key, 3)
    params["fc_w"] = jax.random.uniform(k5, (num_classes, hidden_size),
                                        jnp.float32, -k, k)
    params["fc_b"] = jax.random.uniform(k6, (num_classes,), jnp.float32,
                                        -k, k)
    return params


# ----------------------------------------------------------------------------
# Pure-JAX reference (correctness check only; PyTorch gate order i,f,g,o)
# ----------------------------------------------------------------------------
def lstm_forward_ref(x, params):
    h_seq = jnp.transpose(x, (1, 0, 2)).astype(jnp.float32)  # (T, B, I)
    for (w_ih, w_hh, b_ih, b_hh) in params["layers"]:
        H = w_hh.shape[1]
        B = h_seq.shape[1]

        def step(carry, x_t, w_ih=w_ih, w_hh=w_hh, b_ih=b_ih, b_hh=b_hh, H=H):
            h_prev, c_prev = carry
            gates = x_t @ w_ih.T + h_prev @ w_hh.T + b_ih + b_hh
            i_g = jax.nn.sigmoid(gates[:, 0 * H:1 * H])
            f_g = jax.nn.sigmoid(gates[:, 1 * H:2 * H])
            g_g = jnp.tanh(gates[:, 2 * H:3 * H])
            o_g = jax.nn.sigmoid(gates[:, 3 * H:4 * H])
            c = f_g * c_prev + i_g * g_g
            h = o_g * jnp.tanh(c)
            return (h, c), h

        init = (jnp.zeros((B, H), jnp.float32), jnp.zeros((B, H), jnp.float32))
        _, h_seq = jax.lax.scan(step, init, h_seq)
    return h_seq[-1] @ params["fc_w"].T + params["fc_b"]


# ----------------------------------------------------------------------------
if __name__ == "__main__":
    batch = 8
    seq = 8
    input_size = 16
    hidden_size = 32
    num_layers = 2
    num_classes = 4

    key = jax.random.PRNGKey(0)
    key, kx, kp = jax.random.split(key, 3)
    x = jax.random.normal(kx, (batch, seq, input_size), jnp.float32)
    params = init_params(kp, num_classes, input_size, hidden_size, num_layers)

    out = lstm_forward_pallas(x, params)
    out = jax.block_until_ready(out)

    ref = lstm_forward_ref(x, params)
    assert out.shape == (batch, num_classes)
    assert jnp.allclose(out, ref, atol=1e-4, rtol=1e-4), (
        f"mismatch: max abs diff {jnp.max(jnp.abs(out - ref))}")

    print("KERNEL_OK")
</pallas_src>

<mosaic_0001>
module attributes {stable_mosaic.version = 11 : i64} {
  func.func @kernel(%arg0: i32, %arg1: memref<8x8x16xf32, #tpu.memory_space<vmem>>, %arg2: memref<16x128xf32, #tpu.memory_space<vmem>>, %arg3: memref<32x128xf32, #tpu.memory_space<vmem>>, %arg4: memref<1x128xf32, #tpu.memory_space<vmem>>, %arg5: memref<32x128xf32, #tpu.memory_space<vmem>>, %arg6: memref<32x128xf32, #tpu.memory_space<vmem>>, %arg7: memref<1x128xf32, #tpu.memory_space<vmem>>, %arg8: memref<32x128xf32, #tpu.memory_space<vmem>>, %arg9: memref<1x128xf32, #tpu.memory_space<vmem>>, %arg10: memref<8x128xf32, #tpu.memory_space<vmem>>, %arg11: memref<64x128xf32, #tpu.memory_space<vmem>>, %arg12: memref<64x128xf32, #tpu.memory_space<vmem>>) attributes {dimension_semantics = [#tpu.dimension_semantics<parallel>], iteration_bounds = array<i64: 1>, scalar_prefetch = 0 : i64, scratch_operands = 2 : i64, tpu.core_type = #tpu.core_type<tc>, window_params = [{transform_indices = @transform_0, window_bounds = array<i64: 8, 8, 16>}, {pipeline_mode = #tpu.pipeline_mode<synchronous>, transform_indices = @transform_1, window_bounds = array<i64: 16, 128>}, {pipeline_mode = #tpu.pipeline_mode<synchronous>, transform_indices = @transform_2, window_bounds = array<i64: 32, 128>}, {pipeline_mode = #tpu.pipeline_mode<synchronous>, transform_indices = @transform_3, window_bounds = array<i64: 1, 128>}, {pipeline_mode = #tpu.pipeline_mode<synchronous>, transform_indices = @transform_4, window_bounds = array<i64: 32, 128>}, {pipeline_mode = #tpu.pipeline_mode<synchronous>, transform_indices = @transform_5, window_bounds = array<i64: 32, 128>}, {pipeline_mode = #tpu.pipeline_mode<synchronous>, transform_indices = @transform_6, window_bounds = array<i64: 1, 128>}, {pipeline_mode = #tpu.pipeline_mode<synchronous>, transform_indices = @transform_7, window_bounds = array<i64: 32, 128>}, {pipeline_mode = #tpu.pipeline_mode<synchronous>, transform_indices = @transform_8, window_bounds = array<i64: 1, 128>}, {transform_indices = @transform_9, window_bounds = array<i64: 8, 128>}]} {
    %c0 = arith.constant 0 : index
    %c0_0 = arith.constant 0 : index
    %c0_1 = arith.constant 0 : index
    %0 = vector.load %arg1[%c0, %c0_0, %c0_1] : memref<8x8x16xf32, #tpu.memory_space<vmem>>, vector<8x8x16xf32>
    %1 = vector.shape_cast %0 : vector<8x8x16xf32> to vector<64x16xf32>
    %c0_2 = arith.constant 0 : index
    %c0_3 = arith.constant 0 : index
    %2 = vector.load %arg2[%c0_2, %c0_3] : memref<16x128xf32, #tpu.memory_space<vmem>>, vector<16x128xf32>
    %cst = arith.constant dense<0.000000e+00> : vector<64x128xf32>
    %3 = tpu.matmul %1, %2, %cst {dimension_numbers = #tpu.dot_dimension_numbers<[1], [0], [0], [1], [0, 0, 1, 1], [], []>} : vector<64x16xf32>, vector<16x128xf32>, vector<64x128xf32> -> vector<64x128xf32>
    %c0_4 = arith.constant 0 : index
    %c0_5 = arith.constant 0 : index
    %4 = vector.load %arg4[%c0_4, %c0_5] : memref<1x128xf32, #tpu.memory_space<vmem>>, vector<1x128xf32>
    %5 = vector.broadcast %4 : vector<1x128xf32> to vector<64x128xf32>
    %6 = arith.addf %3, %5 : vector<64x128xf32>
    %c0_6 = arith.constant 0 : index
    %c0_7 = arith.constant 0 : index
    %7 = vector.load %arg11[%c0_6, %c0_7] : memref<64x128xf32, #tpu.memory_space<vmem>>, vector<64x128xf32>
    tpu.vector_store %arg11[%c0_6, %c0_7], %6 {strides = array<i32>} : memref<64x128xf32, #tpu.memory_space<vmem>>, vector<64x128xf32>,
    %c0_8 = arith.constant 0 : index
    %c0_9 = arith.constant 0 : index
    %8 = vector.load %arg3[%c0_8, %c0_9] : memref<32x128xf32, #tpu.memory_space<vmem>>, vector<32x128xf32>
    %c0_10 = arith.constant 0 : index
    %c0_11 = arith.constant 0 : index
    %9 = vector.load %arg5[%c0_10, %c0_11] : memref<32x128xf32, #tpu.memory_space<vmem>>, vector<32x128xf32>
    %c0_12 = arith.constant 0 : index
    %c0_13 = arith.constant 0 : index
    %10 = vector.load %arg7[%c0_12, %c0_13] : memref<1x128xf32, #tpu.memory_space<vmem>>, vector<1x128xf32>
    %cst_14 = arith.constant 0.000000e+00 : f32
    %11 = vector.broadcast %cst_14 : f32 to vector<8x32xf32>
    %cst_15 = arith.constant 0.000000e+00 : f32
    %12 = vector.broadcast %cst_15 : f32 to vector<8x32xf32>
    %c0_i32 = arith.constant 0 : i32
    %c8_i32 = arith.constant 8 : i32
    %13 = arith.muli %c0_i32, %c8_i32 : i32
    %14 = tpu.assume_multiple %13, 8 : i32
    %15 = arith.index_cast %14 : i32 to index
    %c0_16 = arith.constant 0 : index
    %16 = vector.load %arg11[%15, %c0_16] : memref<64x128xf32, #tpu.memory_space<vmem>>, vector<8x128xf32>
    %cst_17 = arith.constant dense<0.000000e+00> : vector<8x128xf32>
    %17 = tpu.matmul %11, %8, %cst_17 {dimension_numbers = #tpu.dot_dimension_numbers<[1], [0], [0], [1], [0, 0, 1, 1], [], []>} : vector<8x32xf32>, vector<32x128xf32>, vector<8x128xf32> -> vector<8x128xf32>
    %18 = arith.addf %16, %17 : vector<8x128xf32>
    %19 = vector.extract_strided_slice %18 {offsets = [0, 0], sizes = [8, 96], strides = [1, 1]} : vector<8x128xf32> to vector<8x96xf32>
    %20 = arith.negf %19 : vector<8x96xf32>
    %21 = math.exp %20 : vector<8x96xf32>
    %cst_18 = arith.constant 1.000000e+00 : f32
    %22 = vector.broadcast %cst_18 : f32 to vector<8x96xf32>
    %23 = arith.addf %22, %21 : vector<8x96xf32>
    %24 = arith.divf %22, %23 : vector<8x96xf32>
    %25 = vector.extract_strided_slice %24 {offsets = [0, 0], sizes = [8, 32], strides = [1, 1]} : vector<8x96xf32> to vector<8x32xf32>
    %26 = vector.extract_strided_slice %24 {offsets = [0, 32], sizes = [8, 32], strides = [1, 1]} : vector<8x96xf32> to vector<8x32xf32>
    %27 = vector.extract_strided_slice %24 {offsets = [0, 64], sizes = [8, 32], strides = [1, 1]} : vector<8x96xf32> to vector<8x32xf32>
    %28 = vector.extract_strided_slice %18 {offsets = [0, 96], sizes = [8, 32], strides = [1, 1]} : vector<8x128xf32> to vector<8x32xf32>
    %29 = math.tanh %28 : vector<8x32xf32>
    %30 = arith.mulf %26, %12 : vector<8x32xf32>
    %31 = arith.mulf %25, %29 : vector<8x32xf32>
    %32 = arith.addf %30, %31 : vector<8x32xf32>
    %33 = math.tanh %32 : vector<8x32xf32>
    %34 = arith.mulf %27, %33 : vector<8x32xf32>
    %cst_19 = arith.constant dense<0.000000e+00> : vector<8x128xf32>
    %35 = tpu.matmul %34, %9, %cst_19 {dimension_numbers = #tpu.dot_dimension_numbers<[1], [0], [0], [1], [0, 0, 1, 1], [], []>} : vector<8x32xf32>, vector<32x128xf32>, vector<8x128xf32> -> vector<8x128xf32>
    %36 = vector.broadcast %10 : vector<1x128xf32> to vector<8x128xf32>
    %37 = arith.addf %35, %36 : vector<8x128xf32>
    %38 = arith.index_cast %14 : i32 to index
    %c0_20 = arith.constant 0 : index
    %39 = vector.load %arg12[%38, %c0_20] : memref<64x128xf32, #tpu.memory_space<vmem>>, vector<8x128xf32>
    tpu.vector_store %arg12[%38, %c0_20], %37 {strides = array<i32>} : memref<64x128xf32, #tpu.memory_space<vmem>>, vector<8x128xf32>,
    %c1_i32 = arith.constant 1 : i32
    %c8_i32_21 = arith.constant 8 : i32
    %40 = arith.muli %c1_i32, %c8_i32_21 : i32
    %41 = tpu.assume_multiple %40, 8 : i32
    %42 = arith.index_cast %41 : i32 to index
    %c0_22 = arith.constant 0 : index
    %43 = vector.load %arg11[%42, %c0_22] : memref<64x128xf32, #tpu.memory_space<vmem>>, vector<8x128xf32>
    %cst_23 = arith.constant dense<0.000000e+00> : vector<8x128xf32>
    %44 = tpu.matmul %34, %8, %cst_23 {dimension_numbers = #tpu.dot_dimension_numbers<[1], [0], [0], [1], [0, 0, 1, 1], [], []>} : vector<8x32xf32>, vector<32x128xf32>, vector<8x128xf32> -> vector<8x128xf32>
    %45 = arith.addf %43, %44 : vector<8x128xf32>
    %46 = vector.extract_strided_slice %45 {offsets = [0, 0], sizes = [8, 96], strides = [1, 1]} : vector<8x128xf32> to vector<8x96xf32>
    %47 = arith.negf %46 : vector<8x96xf32>
    %48 = math.exp %47 : vector<8x96xf32>
    %cst_24 = arith.constant 1.000000e+00 : f32
    %49 = vector.broadcast %cst_24 : f32 to vector<8x96xf32>
    %50 = arith.addf %49, %48 : vector<8x96xf32>
    %51 = arith.divf %49, %50 : vector<8x96xf32>
    %52 = vector.extract_strided_slice %51 {offsets = [0, 0], sizes = [8, 32], strides = [1, 1]} : vector<8x96xf32> to vector<8x32xf32>
    %53 = vector.extract_strided_slice %51 {offsets = [0, 32], sizes = [8, 32], strides = [1, 1]} : vector<8x96xf32> to vector<8x32xf32>
    %54 = vector.extract_strided_slice %51 {offsets = [0, 64], sizes = [8, 32], strides = [1, 1]} : vector<8x96xf32> to vector<8x32xf32>
    %55 = vector.extract_strided_slice %45 {offsets = [0, 96], sizes = [8, 32], strides = [1, 1]} : vector<8x128xf32> to vector<8x32xf32>
    %56 = math.tanh %55 : vector<8x32xf32>
    %57 = arith.mulf %53, %32 : vector<8x32xf32>
    %58 = arith.mulf %52, %56 : vector<8x32xf32>
    %59 = arith.addf %57, %58 : vector<8x32xf32>
    %60 = math.tanh %59 : vector<8x32xf32>
    %61 = arith.mulf %54, %60 : vector<8x32xf32>
    %cst_25 = arith.constant dense<0.000000e+00> : vector<8x128xf32>
    %62 = tpu.matmul %61, %9, %cst_25 {dimension_numbers = #tpu.dot_dimension_numbers<[1], [0], [0], [1], [0, 0, 1, 1], [], []>} : vector<8x32xf32>, vector<32x128xf32>, vector<8x128xf32> -> vector<8x128xf32>
    %63 = vector.broadcast %10 : vector<1x128xf32> to vector<8x128xf32>
    %64 = arith.addf %62, %63 : vector<8x128xf32>
    %65 = arith.index_cast %41 : i32 to index
    %c0_26 = arith.constant 0 : index
    %66 = vector.load %arg12[%65, %c0_26] : memref<64x128xf32, #tpu.memory_space<vmem>>, vector<8x128xf32>
    tpu.vector_store %arg12[%65, %c0_26], %64 {strides = array<i32>} : memref<64x128xf32, #tpu.memory_space<vmem>>, vector<8x128xf32>,
    %c2_i32 = arith.constant 2 : i32
    %c8_i32_27 = arith.constant 8 : i32
    %67 = arith.muli %c2_i32, %c8_i32_27 : i32
    %68 = tpu.assume_multiple %67, 8 : i32
    %69 = arith.index_cast %68 : i32 to index
    %c0_28 = arith.constant 0 : index
    %70 = vector.load %arg11[%69, %c0_28] : memref<64x128xf32, #tpu.memory_space<vmem>>, vector<8x128xf32>
    %cst_29 = arith.constant dense<0.000000e+00> : vector<8x128xf32>
    %71 = tpu.matmul %61, %8, %cst_29 {dimension_numbers = #tpu.dot_dimension_numbers<[1], [0], [0], [1], [0, 0, 1, 1], [], []>} : vector<8x32xf32>, vector<32x128xf32>, vector<8x128xf32> -> vector<8x128xf32>
    %72 = arith.addf %70, %71 : vector<8x128xf32>
    %73 = vector.extract_strided_slice %72 {offsets = [0, 0], sizes = [8, 96], strides = [1, 1]} : vector<8x128xf32> to vector<8x96xf32>
    %74 = arith.negf %73 : vector<8x96xf32>
    %75 = math.exp %74 : vector<8x96xf32>
    %cst_30 = arith.constant 1.000000e+00 : f32
    %76 = vector.broadcast %cst_30 : f32 to vector<8x96xf32>
    %77 = arith.addf %76, %75 : vector<8x96xf32>
    %78 = arith.divf %76, %77 : vector<8x96xf32>
    %79 = vector.extract_strided_slice %78 {offsets = [0, 0], sizes = [8, 32], strides = [1, 1]} : vector<8x96xf32> to vector<8x32xf32>
    %80 = vector.extract_strided_slice %78 {offsets = [0, 32], sizes = [8, 32], strides = [1, 1]} : vector<8x96xf32> to vector<8x32xf32>
    %81 = vector.extract_strided_slice %78 {offsets = [0, 64], sizes = [8, 32], strides = [1, 1]} : vector<8x96xf32> to vector<8x32xf32>
    %82 = vector.extract_strided_slice %72 {offsets = [0, 96], sizes = [8, 32], strides = [1, 1]} : vector<8x128xf32> to vector<8x32xf32>
    %83 = math.tanh %82 : vector<8x32xf32>
    %84 = arith.mulf %80, %59 : vector<8x32xf32>
    %85 = arith.mulf %79, %83 : vector<8x32xf32>
    %86 = arith.addf %84, %85 : vector<8x32xf32>
    %87 = math.tanh %86 : vector<8x32xf32>
    %88 = arith.mulf %81, %87 : vector<8x32xf32>
    %cst_31 = arith.constant dense<0.000000e+00> : vector<8x128xf32>
    %89 = tpu.matmul %88, %9, %cst_31 {dimension_numbers = #tpu.dot_dimension_numbers<[1], [0], [0], [1], [0, 0, 1, 1], [], []>} : vector<8x32xf32>, vector<32x128xf32>, vector<8x128xf32> -> vector<8x128xf32>
    %90 = vector.broadcast %10 : vector<1x128xf32> to vector<8x128xf32>
    %91 = arith.addf %89, %90 : vector<8x128xf32>
    %92 = arith.index_cast %68 : i32 to index
    %c0_32 = arith.constant 0 : index
    %93 = vector.load %arg12[%92, %c0_32] : memref<64x128xf32, #tpu.memory_space<vmem>>, vector<8x128xf32>
    tpu.vector_store %arg12[%92, %c0_32], %91 {strides = array<i32>} : memref<64x128xf32, #tpu.memory_space<vmem>>, vector<8x128xf32>,
    %c3_i32 = arith.constant 3 : i32
    %c8_i32_33 = arith.constant 8 : i32
    %94 = arith.muli %c3_i32, %c8_i32_33 : i32
    %95 = tpu.assume_multiple %94, 8 : i32
    %96 = arith.index_cast %95 : i32 to index
    %c0_34 = arith.constant 0 : index
    %97 = vector.load %arg11[%96, %c0_34] : memref<64x128xf32, #tpu.memory_space<vmem>>, vector<8x128xf32>
    %cst_35 = arith.constant dense<0.000000e+00> : vector<8x128xf32>
    %98 = tpu.matmul %88, %8, %cst_35 {dimension_numbers = #tpu.dot_dimension_numbers<[1], [0], [0], [1], [0, 0, 1, 1], [], []>} : vector<8x32xf32>, vector<32x128xf32>, vector<8x128xf32> -> vector<8x128xf32>
    %99 = arith.addf %97, %98 : vector<8x128xf32>
    %100 = vector.extract_strided_slice %99 {offsets = [0, 0], sizes = [8, 96], strides = [1, 1]} : vector<8x128xf32> to vector<8x96xf32>
    %101 = arith.negf %100 : vector<8x96xf32>
    %102 = math.exp %101 : vector<8x96xf32>
    %cst_36 = arith.constant 1.000000e+00 : f32
    %103 = vector.broadcast %cst_36 : f32 to vector<8x96xf32>
    %104 = arith.addf %103, %102 : vector<8x96xf32>
    %105 = arith.divf %103, %104 : vector<8x96xf32>
    %106 = vector.extract_strided_slice %105 {offsets = [0, 0], sizes = [8, 32], strides = [1, 1]} : vector<8x96xf32> to vector<8x32xf32>
    %107 = vector.extract_strided_slice %105 {offsets = [0, 32], sizes = [8, 32], strides = [1, 1]} : vector<8x96xf32> to vector<8x32xf32>
    %108 = vector.extract_strided_slice %105 {offsets = [0, 64], sizes = [8, 32], strides = [1, 1]} : vector<8x96xf32> to vector<8x32xf32>
    %109 = vector.extract_strided_slice %99 {offsets = [0, 96], sizes = [8, 32], strides = [1, 1]} : vector<8x128xf32> to vector<8x32xf32>
    %110 = math.tanh %109 : vector<8x32xf32>
    %111 = arith.mulf %107, %86 : vector<8x32xf32>
    %112 = arith.mulf %106, %110 : vector<8x32xf32>
    %113 = arith.addf %111, %112 : vector<8x32xf32>
    %114 = math.tanh %113 : vector<8x32xf32>
    %115 = arith.mulf %108, %114 : vector<8x32xf32>
    %cst_37 = arith.constant dense<0.000000e+00> : vector<8x128xf32>
    %116 = tpu.matmul %115, %9, %cst_37 {dimension_numbers = #tpu.dot_dimension_numbers<[1], [0], [0], [1], [0, 0, 1, 1], [], []>} : vector<8x32xf32>, vector<32x128xf32>, vector<8x128xf32> -> vector<8x128xf32>
    %117 = vector.broadcast %10 : vector<1x128xf32> to vector<8x128xf32>
    %118 = arith.addf %116, %117 : vector<8x128xf32>
    %119 = arith.index_cast %95 : i32 to index
    %c0_38 = arith.constant 0 : index
    %120 = vector.load %arg12[%119, %c0_38] : memref<64x128xf32, #tpu.memory_space<vmem>>, vector<8x128xf32>
    tpu.vector_store %arg12[%119, %c0_38], %118 {strides = array<i32>} : memref<64x128xf32, #tpu.memory_space<vmem>>, vector<8x128xf32>,
    %c4_i32 = arith.constant 4 : i32
    %c8_i32_39 = arith.constant 8 : i32
    %121 = arith.muli %c4_i32, %c8_i32_39 : i32
    %122 = tpu.assume_multiple %121, 8 : i32
    %123 = arith.index_cast %122 : i32 to index
    %c0_40 = arith.constant 0 : index
    %124 = vector.load %arg11[%123, %c0_40] : memref<64x128xf32, #tpu.memory_space<vmem>>, vector<8x128xf32>
    %cst_41 = arith.constant dense<0.000000e+00> : vector<8x128xf32>
    %125 = tpu.matmul %115, %8, %cst_41 {dimension_numbers = #tpu.dot_dimension_numbers<[1], [0], [0], [1], [0, 0, 1, 1], [], []>} : vector<8x32xf32>, vector<32x128xf32>, vector<8x128xf32> -> vector<8x128xf32>
    %126 = arith.addf %124, %125 : vector<8x128xf32>
    %127 = vector.extract_strided_slice %126 {offsets = [0, 0], sizes = [8, 96], strides = [1, 1]} : vector<8x128xf32> to vector<8x96xf32>
    %128 = arith.negf %127 : vector<8x96xf32>
    %129 = math.exp %128 : vector<8x96xf32>
    %cst_42 = arith.constant 1.000000e+00 : f32
    %130 = vector.broadcast %cst_42 : f32 to vector<8x96xf32>
    %131 = arith.addf %130, %129 : vector<8x96xf32>
    %132 = arith.divf %130, %131 : vector<8x96xf32>
    %133 = vector.extract_strided_slice %132 {offsets = [0, 0], sizes = [8, 32], strides = [1, 1]} : vector<8x96xf32> to vector<8x32xf32>
    %134 = vector.extract_strided_slice %132 {offsets = [0, 32], sizes = [8, 32], strides = [1, 1]} : vector<8x96xf32> to vector<8x32xf32>
    %135 = vector.extract_strided_slice %132 {offsets = [0, 64], sizes = [8, 32], strides = [1, 1]} : vector<8x96xf32> to vector<8x32xf32>
    %136 = vector.extract_strided_slice %126 {offsets = [0, 96], sizes = [8, 32], strides = [1, 1]} : vector<8x128xf32> to vector<8x32xf32>
    %137 = math.tanh %136 : vector<8x32xf32>
    %138 = arith.mulf %134, %113 : vector<8x32xf32>
    %139 = arith.mulf %133, %137 : vector<8x32xf32>
    %140 = arith.addf %138, %139 : vector<8x32xf32>
    %141 = math.tanh %140 : vector<8x32xf32>
    %142 = arith.mulf %135, %141 : vector<8x32xf32>
    %cst_43 = arith.constant dense<0.000000e+00> : vector<8x128xf32>
    %143 = tpu.matmul %142, %9, %cst_43 {dimension_numbers = #tpu.dot_dimension_numbers<[1], [0], [0], [1], [0, 0, 1, 1], [], []>} : vector<8x32xf32>, vector<32x128xf32>, vector<8x128xf32> -> vector<8x128xf32>
    %144 = vector.broadcast %10 : vector<1x128xf32> to vector<8x128xf32>
    %145 = arith.addf %143, %144 : vector<8x128xf32>
    %146 = arith.index_cast %122 : i32 to index
    %c0_44 = arith.constant 0 : index
    %147 = vector.load %arg12[%146, %c0_44] : memref<64x128xf32, #tpu.memory_space<vmem>>, vector<8x128xf32>
    tpu.vector_store %arg12[%146, %c0_44], %145 {strides = array<i32>} : memref<64x128xf32, #tpu.memory_space<vmem>>, vector<8x128xf32>,
    %c5_i32 = arith.constant 5 : i32
    %c8_i32_45 = arith.constant 8 : i32
    %148 = arith.muli %c5_i32, %c8_i32_45 : i32
    %149 = tpu.assume_multiple %148, 8 : i32
    %150 = arith.index_cast %149 : i32 to index
    %c0_46 = arith.constant 0 : index
    %151 = vector.load %arg11[%150, %c0_46] : memref<64x128xf32, #tpu.memory_space<vmem>>, vector<8x128xf32>
    %cst_47 = arith.constant dense<0.000000e+00> : vector<8x128xf32>
    %152 = tpu.matmul %142, %8, %cst_47 {dimension_numbers = #tpu.dot_dimension_numbers<[1], [0], [0], [1], [0, 0, 1, 1], [], []>} : vector<8x32xf32>, vector<32x128xf32>, vector<8x128xf32> -> vector<8x128xf32>
    %153 = arith.addf %151, %152 : vector<8x128xf32>
    %154 = vector.extract_strided_slice %153 {offsets = [0, 0], sizes = [8, 96], strides = [1, 1]} : vector<8x128xf32> to vector<8x96xf32>
    %155 = arith.negf %154 : vector<8x96xf32>
    %156 = math.exp %155 : vector<8x96xf32>
    %cst_48 = arith.constant 1.000000e+00 : f32
    %157 = vector.broadcast %cst_48 : f32 to vector<8x96xf32>
    %158 = arith.addf %157, %156 : vector<8x96xf32>
    %159 = arith.divf %157, %158 : vector<8x96xf32>
    %160 = vector.extract_strided_slice %159 {offsets = [0, 0], sizes = [8, 32], strides = [1, 1]} : vector<8x96xf32> to vector<8x32xf32>
    %161 = vector.extract_strided_slice %159 {offsets = [0, 32], sizes = [8, 32], strides = [1, 1]} : vector<8x96xf32> to vector<8x32xf32>
    %162 = vector.extract_strided_slice %159 {offsets = [0, 64], sizes = [8, 32], strides = [1, 1]} : vector<8x96xf32> to vector<8x32xf32>
    %163 = vector.extract_strided_slice %153 {offsets = [0, 96], sizes = [8, 32], strides = [1, 1]} : vector<8x128xf32> to vector<8x32xf32>
    %164 = math.tanh %163 : vector<8x32xf32>
    %165 = arith.mulf %161, %140 : vector<8x32xf32>
    %166 = arith.mulf %160, %164 : vector<8x32xf32>
    %167 = arith.addf %165, %166 : vector<8x32xf32>
    %168 = math.tanh %167 : vector<8x32xf32>
    %169 = arith.mulf %162, %168 : vector<8x32xf32>
    %cst_49 = arith.constant dense<0.000000e+00> : vector<8x128xf32>
    %170 = tpu.matmul %169, %9, %cst_49 {dimension_numbers = #tpu.dot_dimension_numbers<[1], [0], [0], [1], [0, 0, 1, 1], [], []>} : vector<8x32xf32>, vector<32x128xf32>, vector<8x128xf32> -> vector<8x128xf32>
    %171 = vector.broadcast %10 : vector<1x128xf32> to vector<8x128xf32>
    %172 = arith.addf %170, %171 : vector<8x128xf32>
    %173 = arith.index_cast %149 : i32 to index
    %c0_50 = arith.constant 0 : index
    %174 = vector.load %arg12[%173, %c0_50] : memref<64x128xf32, #tpu.memory_space<vmem>>, vector<8x128xf32>
    tpu.vector_store %arg12[%173, %c0_50], %172 {strides = array<i32>} : memref<64x128xf32, #tpu.memory_space<vmem>>, vector<8x128xf32>,
    %c6_i32 = arith.constant 6 : i32
    %c8_i32_51 = arith.constant 8 : i32
    %175 = arith.muli %c6_i32, %c8_i32_51 : i32
    %176 = tpu.assume_multiple %175, 8 : i32
    %177 = arith.index_cast %176 : i32 to index
    %c0_52 = arith.constant 0 : index
    %178 = vector.load %arg11[%177, %c0_52] : memref<64x128xf32, #tpu.memory_space<vmem>>, vector<8x128xf32>
    %cst_53 = arith.constant dense<0.000000e+00> : vector<8x128xf32>
    %179 = tpu.matmul %169, %8, %cst_53 {dimension_numbers = #tpu.dot_dimension_numbers<[1], [0], [0], [1], [0, 0, 1, 1], [], []>} : vector<8x32xf32>, vector<32x128xf32>, vector<8x128xf32> -> vector<8x128xf32>
    %180 = arith.addf %178, %179 : vector<8x128xf32>
    %181 = vector.extract_strided_slice %180 {offsets = [0, 0], sizes = [8, 96], strides = [1, 1]} : vector<8x128xf32> to vector<8x96xf32>
    %182 = arith.negf %181 : vector<8x96xf32>
    %183 = math.exp %182 : vector<8x96xf32>
    %cst_54 = arith.constant 1.000000e+00 : f32
    %184 = vector.broadcast %cst_54 : f32 to vector<8x96xf32>
    %185 = arith.addf %184, %183 : vector<8x96xf32>
    %186 = arith.divf %184, %185 : vector<8x96xf32>
    %187 = vector.extract_strided_slice %186 {offsets = [0, 0], sizes = [8, 32], strides = [1, 1]} : vector<8x96xf32> to vector<8x32xf32>
    %188 = vector.extract_strided_slice %186 {offsets = [0, 32], sizes = [8, 32], strides = [1, 1]} : vector<8x96xf32> to vector<8x32xf32>
    %189 = vector.extract_strided_slice %186 {offsets = [0, 64], sizes = [8, 32], strides = [1, 1]} : vector<8x96xf32> to vector<8x32xf32>
    %190 = vector.extract_strided_slice %180 {offsets = [0, 96], sizes = [8, 32], strides = [1, 1]} : vector<8x128xf32> to vector<8x32xf32>
    %191 = math.tanh %190 : vector<8x32xf32>
    %192 = arith.mulf %188, %167 : vector<8x32xf32>
    %193 = arith.mulf %187, %191 : vector<8x32xf32>
    %194 = arith.addf %192, %193 : vector<8x32xf32>
    %195 = math.tanh %194 : vector<8x32xf32>
    %196 = arith.mulf %189, %195 : vector<8x32xf32>
    %cst_55 = arith.constant dense<0.000000e+00> : vector<8x128xf32>
    %197 = tpu.matmul %196, %9, %cst_55 {dimension_numbers = #tpu.dot_dimension_numbers<[1], [0], [0], [1], [0, 0, 1, 1], [], []>} : vector<8x32xf32>, vector<32x128xf32>, vector<8x128xf32> -> vector<8x128xf32>
    %198 = vector.broadcast %10 : vector<1x128xf32> to vector<8x128xf32>
    %199 = arith.addf %197, %198 : vector<8x128xf32>
    %200 = arith.index_cast %176 : i32 to index
    %c0_56 = arith.constant 0 : index
    %201 = vector.load %arg12[%200, %c0_56] : memref<64x128xf32, #tpu.memory_space<vmem>>, vector<8x128xf32>
    tpu.vector_store %arg12[%200, %c0_56], %199 {strides = array<i32>} : memref<64x128xf32, #tpu.memory_space<vmem>>, vector<8x128xf32>,
    %c7_i32 = arith.constant 7 : i32
    %c8_i32_57 = arith.constant 8 : i32
    %202 = arith.muli %c7_i32, %c8_i32_57 : i32
    %203 = tpu.assume_multiple %202, 8 : i32
    %204 = arith.index_cast %203 : i32 to index
    %c0_58 = arith.constant 0 : index
    %205 = vector.load %arg11[%204, %c0_58] : memref<64x128xf32, #tpu.memory_space<vmem>>, vector<8x128xf32>
    %cst_59 = arith.constant dense<0.000000e+00> : vector<8x128xf32>
    %206 = tpu.matmul %196, %8, %cst_59 {dimension_numbers = #tpu.dot_dimension_numbers<[1], [0], [0], [1], [0, 0, 1, 1], [], []>} : vector<8x32xf32>, vector<32x128xf32>, vector<8x128xf32> -> vector<8x128xf32>
    %207 = arith.addf %205, %206 : vector<8x128xf32>
    %208 = vector.extract_strided_slice %207 {offsets = [0, 0], sizes = [8, 96], strides = [1, 1]} : vector<8x128xf32> to vector<8x96xf32>
    %209 = arith.negf %208 : vector<8x96xf32>
    %210 = math.exp %209 : vector<8x96xf32>
    %cst_60 = arith.constant 1.000000e+00 : f32
    %211 = vector.broadcast %cst_60 : f32 to vector<8x96xf32>
    %212 = arith.addf %211, %210 : vector<8x96xf32>
    %213 = arith.divf %211, %212 : vector<8x96xf32>
    %214 = vector.extract_strided_slice %213 {offsets = [0, 0], sizes = [8, 32], strides = [1, 1]} : vector<8x96xf32> to vector<8x32xf32>
    %215 = vector.extract_strided_slice %213 {offsets = [0, 32], sizes = [8, 32], strides = [1, 1]} : vector<8x96xf32> to vector<8x32xf32>
    %216 = vector.extract_strided_slice %213 {offsets = [0, 64], sizes = [8, 32], strides = [1, 1]} : vector<8x96xf32> to vector<8x32xf32>
    %217 = vector.extract_strided_slice %207 {offsets = [0, 96], sizes = [8, 32], strides = [1, 1]} : vector<8x128xf32> to vector<8x32xf32>
    %218 = math.tanh %217 : vector<8x32xf32>
    %219 = arith.mulf %215, %194 : vector<8x32xf32>
    %220 = arith.mulf %214, %218 : vector<8x32xf32>
    %221 = arith.addf %219, %220 : vector<8x32xf32>
    %222 = math.tanh %221 : vector<8x32xf32>
    %223 = arith.mulf %216, %222 : vector<8x32xf32>
    %cst_61 = arith.constant dense<0.000000e+00> : vector<8x128xf32>
    %224 = tpu.matmul %223, %9, %cst_61 {dimension_numbers = #tpu.dot_dimension_numbers<[1], [0], [0], [1], [0, 0, 1, 1], [], []>} : vector<8x32xf32>, vector<32x128xf32>, vector<8x128xf32> -> vector<8x128xf32>
    %225 = vector.broadcast %10 : vector<1x128xf32> to vector<8x128xf32>
    %226 = arith.addf %224, %225 : vector<8x128xf32>
    %227 = arith.index_cast %203 : i32 to index
    %c0_62 = arith.constant 0 : index
    %228 = vector.load %arg12[%227, %c0_62] : memref<64x128xf32, #tpu.memory_space<vmem>>, vector<8x128xf32>
    tpu.vector_store %arg12[%227, %c0_62], %226 {strides = array<i32>} : memref<64x128xf32, #tpu.memory_space<vmem>>, vector<8x128xf32>,
    %c8_i32_63 = arith.constant 8 : i32
    %c0_64 = arith.constant 0 : index
    %c0_65 = arith.constant 0 : index
    %229 = vector.load %arg6[%c0_64, %c0_65] : memref<32x128xf32, #tpu.memory_space<vmem>>, vector<32x128xf32>
    %cst_66 = arith.constant 0.000000e+00 : f32
    %230 = vector.broadcast %cst_66 : f32 to vector<8x32xf32>
    %cst_67 = arith.constant 0.000000e+00 : f32
    %231 = vector.broadcast %cst_67 : f32 to vector<8x32xf32>
    %c0_i32_68 = arith.constant 0 : i32
    %c8_i32_69 = arith.constant 8 : i32
    %232 = arith.muli %c0_i32_68, %c8_i32_69 : i32
    %233 = tpu.assume_multiple %232, 8 : i32
    %234 = arith.index_cast %233 : i32 to index
    %c0_70 = arith.constant 0 : index
    %235 = vector.load %arg12[%234, %c0_70] : memref<64x128xf32, #tpu.memory_space<vmem>>, vector<8x128xf32>
    %cst_71 = arith.constant dense<0.000000e+00> : vector<8x128xf32>
    %236 = tpu.matmul %230, %229, %cst_71 {dimension_numbers = #tpu.dot_dimension_numbers<[1], [0], [0], [1], [0, 0, 1, 1], [], []>} : vector<8x32xf32>, vector<32x128xf32>, vector<8x128xf32> -> vector<8x128xf32>
    %237 = arith.addf %235, %236 : vector<8x128xf32>
    %238 = vector.extract_strided_slice %237 {offsets = [0, 0], sizes = [8, 96], strides = [1, 1]} : vector<8x128xf32> to vector<8x96xf32>
    %239 = arith.negf %238 : vector<8x96xf32>
    %240 = math.exp %239 : vector<8x96xf32>
    %cst_72 = arith.constant 1.000000e+00 : f32
    %241 = vector.broadcast %cst_72 : f32 to vector<8x96xf32>
    %242 = arith.addf %241, %240 : vector<8x96xf32>
    %243 = arith.divf %241, %242 : vector<8x96xf32>
    %244 = vector.extract_strided_slice %243 {offsets = [0, 0], sizes = [8, 32], strides = [1, 1]} : vector<8x96xf32> to vector<8x32xf32>
    %245 = vector.extract_strided_slice %243 {offsets = [0, 32], sizes = [8, 32], strides = [1, 1]} : vector<8x96xf32> to vector<8x32xf32>
    %246 = vector.extract_strided_slice %243 {offsets = [0, 64], sizes = [8, 32], strides = [1, 1]} : vector<8x96xf32> to vector<8x32xf32>
    %247 = vector.extract_strided_slice %237 {offsets = [0, 96], sizes = [8, 32], strides = [1, 1]} : vector<8x128xf32> to vector<8x32xf32>
    %248 = math.tanh %247 : vector<8x32xf32>
    %249 = arith.mulf %245, %231 : vector<8x32xf32>
    %250 = arith.mulf %244, %248 : vector<8x32xf32>
    %251 = arith.addf %249, %250 : vector<8x32xf32>
    %252 = math.tanh %251 : vector<8x32xf32>
    %253 = arith.mulf %246, %252 : vector<8x32xf32>
    %c1_i32_73 = arith.constant 1 : i32
    %c8_i32_74 = arith.constant 8 : i32
    %254 = arith.muli %c1_i32_73, %c8_i32_74 : i32
    %255 = tpu.assume_multiple %254, 8 : i32
    %256 = arith.index_cast %255 : i32 to index
    %c0_75 = arith.constant 0 : index
    %257 = vector.load %arg12[%256, %c0_75] : memref<64x128xf32, #tpu.memory_space<vmem>>, vector<8x128xf32>
    %cst_76 = arith.constant dense<0.000000e+00> : vector<8x128xf32>
    %258 = tpu.matmul %253, %229, %cst_76 {dimension_numbers = #tpu.dot_dimension_numbers<[1], [0], [0], [1], [0, 0, 1, 1], [], []>} : vector<8x32xf32>, vector<32x128xf32>, vector<8x128xf32> -> vector<8x128xf32>
    %259 = arith.addf %257, %258 : vector<8x128xf32>
    %260 = vector.extract_strided_slice %259 {offsets = [0, 0], sizes = [8, 96], strides = [1, 1]} : vector<8x128xf32> to vector<8x96xf32>
    %261 = arith.negf %260 : vector<8x96xf32>
    %262 = math.exp %261 : vector<8x96xf32>
    %cst_77 = arith.constant 1.000000e+00 : f32
    %263 = vector.broadcast %cst_77 : f32 to vector<8x96xf32>
    %264 = arith.addf %263, %262 : vector<8x96xf32>
    %265 = arith.divf %263, %264 : vector<8x96xf32>
    %266 = vector.extract_strided_slice %265 {offsets = [0, 0], sizes = [8, 32], strides = [1, 1]} : vector<8x96xf32> to vector<8x32xf32>
    %267 = vector.extract_strided_slice %265 {offsets = [0, 32], sizes = [8, 32], strides = [1, 1]} : vector<8x96xf32> to vector<8x32xf32>
    %268 = vector.extract_strided_slice %265 {offsets = [0, 64], sizes = [8, 32], strides = [1, 1]} : vector<8x96xf32> to vector<8x32xf32>
    %269 = vector.extract_strided_slice %259 {offsets = [0, 96], sizes = [8, 32], strides = [1, 1]} : vector<8x128xf32> to vector<8x32xf32>
    %270 = math.tanh %269 : vector<8x32xf32>
    %271 = arith.mulf %267, %251 : vector<8x32xf32>
    %272 = arith.mulf %266, %270 : vector<8x32xf32>
    %273 = arith.addf %271, %272 : vector<8x32xf32>
    %274 = math.tanh %273 : vector<8x32xf32>
    %275 = arith.mulf %268, %274 : vector<8x32xf32>
    %c2_i32_78 = arith.constant 2 : i32
    %c8_i32_79 = arith.constant 8 : i32
    %276 = arith.muli %c2_i32_78, %c8_i32_79 : i32
    %277 = tpu.assume_multiple %276, 8 : i32
    %278 = arith.index_cast %277 : i32 to index
    %c0_80 = arith.constant 0 : index
    %279 = vector.load %arg12[%278, %c0_80] : memref<64x128xf32, #tpu.memory_space<vmem>>, vector<8x128xf32>
    %cst_81 = arith.constant dense<0.000000e+00> : vector<8x128xf32>
    %280 = tpu.matmul %275, %229, %cst_81 {dimension_numbers = #tpu.dot_dimension_numbers<[1], [0], [0], [1], [0, 0, 1, 1], [], []>} : vector<8x32xf32>, vector<32x128xf32>, vector<8x128xf32> -> vector<8x128xf32>
    %281 = arith.addf %279, %280 : vector<8x128xf32>
    %282 = vector.extract_strided_slice %281 {offsets = [0, 0], sizes = [8, 96], strides = [1, 1]} : vector<8x128xf32> to vector<8x96xf32>
    %283 = arith.negf %282 : vector<8x96xf32>
    %284 = math.exp %283 : vector<8x96xf32>
    %cst_82 = arith.constant 1.000000e+00 : f32
    %285 = vector.broadcast %cst_82 : f32 to vector<8x96xf32>
    %286 = arith.addf %285, %284 : vector<8x96xf32>
    %287 = arith.divf %285, %286 : vector<8x96xf32>
    %288 = vector.extract_strided_slice %287 {offsets = [0, 0], sizes = [8, 32], strides = [1, 1]} : vector<8x96xf32> to vector<8x32xf32>
    %289 = vector.extract_strided_slice %287 {offsets = [0, 32], sizes = [8, 32], strides = [1, 1]} : vector<8x96xf32> to vector<8x32xf32>
    %290 = vector.extract_strided_slice %287 {offsets = [0, 64], sizes = [8, 32], strides = [1, 1]} : vector<8x96xf32> to vector<8x32xf32>
    %291 = vector.extract_strided_slice %281 {offsets = [0, 96], sizes = [8, 32], strides = [1, 1]} : vector<8x128xf32> to vector<8x32xf32>
    %292 = math.tanh %291 : vector<8x32xf32>
    %293 = arith.mulf %289, %273 : vector<8x32xf32>
    %294 = arith.mulf %288, %292 : vector<8x32xf32>
    %295 = arith.addf %293, %294 : vector<8x32xf32>
    %296 = math.tanh %295 : vector<8x32xf32>
    %297 = arith.mulf %290, %296 : vector<8x32xf32>
    %c3_i32_83 = arith.constant 3 : i32
    %c8_i32_84 = arith.constant 8 : i32
    %298 = arith.muli %c3_i32_83, %c8_i32_84 : i32
    %299 = tpu.assume_multiple %298, 8 : i32
    %300 = arith.index_cast %299 : i32 to index
    %c0_85 = arith.constant 0 : index
    %301 = vector.load %arg12[%300, %c0_85] : memref<64x128xf32, #tpu.memory_space<vmem>>, vector<8x128xf32>
    %cst_86 = arith.constant dense<0.000000e+00> : vector<8x128xf32>
    %302 = tpu.matmul %297, %229, %cst_86 {dimension_numbers = #tpu.dot_dimension_numbers<[1], [0], [0], [1], [0, 0, 1, 1], [], []>} : vector<8x32xf32>, vector<32x128xf32>, vector<8x128xf32> -> vector<8x128xf32>
    %303 = arith.addf %301, %302 : vector<8x128xf32>
    %304 = vector.extract_strided_slice %303 {offsets = [0, 0], sizes = [8, 96], strides = [1, 1]} : vector<8x128xf32> to vector<8x96xf32>
    %305 = arith.negf %304 : vector<8x96xf32>
    %306 = math.exp %305 : vector<8x96xf32>
    %cst_87 = arith.constant 1.000000e+00 : f32
    %307 = vector.broadcast %cst_87 : f32 to vector<8x96xf32>
    %308 = arith.addf %307, %306 : vector<8x96xf32>
    %309 = arith.divf %307, %308 : vector<8x96xf32>
    %310 = vector.extract_strided_slice %309 {offsets = [0, 0], sizes = [8, 32], strides = [1, 1]} : vector<8x96xf32> to vector<8x32xf32>
    %311 = vector.extract_strided_slice %309 {offsets = [0, 32], sizes = [8, 32], strides = [1, 1]} : vector<8x96xf32> to vector<8x32xf32>
    %312 = vector.extract_strided_slice %309 {offsets = [0, 64], sizes = [8, 32], strides = [1, 1]} : vector<8x96xf32> to vector<8x32xf32>
    %313 = vector.extract_strided_slice %303 {offsets = [0, 96], sizes = [8, 32], strides = [1, 1]} : vector<8x128xf32> to vector<8x32xf32>
    %314 = math.tanh %313 : vector<8x32xf32>
    %315 = arith.mulf %311, %295 : vector<8x32xf32>
    %316 = arith.mulf %310, %314 : vector<8x32xf32>
    %317 = arith.addf %315, %316 : vector<8x32xf32>
    %318 = math.tanh %317 : vector<8x32xf32>
    %319 = arith.mulf %312, %318 : vector<8x32xf32>
    %c4_i32_88 = arith.constant 4 : i32
    %c8_i32_89 = arith.constant 8 : i32
    %320 = arith.muli %c4_i32_88, %c8_i32_89 : i32
    %321 = tpu.assume_multiple %320, 8 : i32
    %322 = arith.index_cast %321 : i32 to index
    %c0_90 = arith.constant 0 : index
    %323 = vector.load %arg12[%322, %c0_90] : memref<64x128xf32, #tpu.memory_space<vmem>>, vector<8x128xf32>
    %cst_91 = arith.constant dense<0.000000e+00> : vector<8x128xf32>
    %324 = tpu.matmul %319, %229, %cst_91 {dimension_numbers = #tpu.dot_dimension_numbers<[1], [0], [0], [1], [0, 0, 1, 1], [], []>} : vector<8x32xf32>, vector<32x128xf32>, vector<8x128xf32> -> vector<8x128xf32>
    %325 = arith.addf %323, %324 : vector<8x128xf32>
    %326 = vector.extract_strided_slice %325 {offsets = [0, 0], sizes = [8, 96], strides = [1, 1]} : vector<8x128xf32> to vector<8x96xf32>
    %327 = arith.negf %326 : vector<8x96xf32>
    %328 = math.exp %327 : vector<8x96xf32>
    %cst_92 = arith.constant 1.000000e+00 : f32
    %329 = vector.broadcast %cst_92 : f32 to vector<8x96xf32>
    %330 = arith.addf %329, %328 : vector<8x96xf32>
    %331 = arith.divf %329, %330 : vector<8x96xf32>
    %332 = vector.extract_strided_slice %331 {offsets = [0, 0], sizes = [8, 32], strides = [1, 1]} : vector<8x96xf32> to vector<8x32xf32>
    %333 = vector.extract_strided_slice %331 {offsets = [0, 32], sizes = [8, 32], strides = [1, 1]} : vector<8x96xf32> to vector<8x32xf32>
    %334 = vector.extract_strided_slice %331 {offsets = [0, 64], sizes = [8, 32], strides = [1, 1]} : vector<8x96xf32> to vector<8x32xf32>
    %335 = vector.extract_strided_slice %325 {offsets = [0, 96], sizes = [8, 32], strides = [1, 1]} : vector<8x128xf32> to vector<8x32xf32>
    %336 = math.tanh %335 : vector<8x32xf32>
    %337 = arith.mulf %333, %317 : vector<8x32xf32>
    %338 = arith.mulf %332, %336 : vector<8x32xf32>
    %339 = arith.addf %337, %338 : vector<8x32xf32>
    %340 = math.tanh %339 : vector<8x32xf32>
    %341 = arith.mulf %334, %340 : vector<8x32xf32>
    %c5_i32_93 = arith.constant 5 : i32
    %c8_i32_94 = arith.constant 8 : i32
    %342 = arith.muli %c5_i32_93, %c8_i32_94 : i32
    %343 = tpu.assume_multiple %342, 8 : i32
    %344 = arith.index_cast %343 : i32 to index
    %c0_95 = arith.constant 0 : index
    %345 = vector.load %arg12[%344, %c0_95] : memref<64x128xf32, #tpu.memory_space<vmem>>, vector<8x128xf32>
    %cst_96 = arith.constant dense<0.000000e+00> : vector<8x128xf32>
    %346 = tpu.matmul %341, %229, %cst_96 {dimension_numbers = #tpu.dot_dimension_numbers<[1], [0], [0], [1], [0, 0, 1, 1], [], []>} : vector<8x32xf32>, vector<32x128xf32>, vector<8x128xf32> -> vector<8x128xf32>
    %347 = arith.addf %345, %346 : vector<8x128xf32>
    %348 = vector.extract_strided_slice %347 {offsets = [0, 0], sizes = [8, 96], strides = [1, 1]} : vector<8x128xf32> to vector<8x96xf32>
    %349 = arith.negf %348 : vector<8x96xf32>
    %350 = math.exp %349 : vector<8x96xf32>
    %cst_97 = arith.constant 1.000000e+00 : f32
    %351 = vector.broadcast %cst_97 : f32 to vector<8x96xf32>
    %352 = arith.addf %351, %350 : vector<8x96xf32>
    %353 = arith.divf %351, %352 : vector<8x96xf32>
    %354 = vector.extract_strided_slice %353 {offsets = [0, 0], sizes = [8, 32], strides = [1, 1]} : vector<8x96xf32> to vector<8x32xf32>
    %355 = vector.extract_strided_slice %353 {offsets = [0, 32], sizes = [8, 32], strides = [1, 1]} : vector<8x96xf32> to vector<8x32xf32>
    %356 = vector.extract_strided_slice %353 {offsets = [0, 64], sizes = [8, 32], strides = [1, 1]} : vector<8x96xf32> to vector<8x32xf32>
    %357 = vector.extract_strided_slice %347 {offsets = [0, 96], sizes = [8, 32], strides = [1, 1]} : vector<8x128xf32> to vector<8x32xf32>
    %358 = math.tanh %357 : vector<8x32xf32>
    %359 = arith.mulf %355, %339 : vector<8x32xf32>
    %360 = arith.mulf %354, %358 : vector<8x32xf32>
    %361 = arith.addf %359, %360 : vector<8x32xf32>
    %362 = math.tanh %361 : vector<8x32xf32>
    %363 = arith.mulf %356, %362 : vector<8x32xf32>
    %c6_i32_98 = arith.constant 6 : i32
    %c8_i32_99 = arith.constant 8 : i32
    %364 = arith.muli %c6_i32_98, %c8_i32_99 : i32
    %365 = tpu.assume_multiple %364, 8 : i32
    %366 = arith.index_cast %365 : i32 to index
    %c0_100 = arith.constant 0 : index
    %367 = vector.load %arg12[%366, %c0_100] : memref<64x128xf32, #tpu.memory_space<vmem>>, vector<8x128xf32>
    %cst_101 = arith.constant dense<0.000000e+00> : vector<8x128xf32>
    %368 = tpu.matmul %363, %229, %cst_101 {dimension_numbers = #tpu.dot_dimension_numbers<[1], [0], [0], [1], [0, 0, 1, 1], [], []>} : vector<8x32xf32>, vector<32x128xf32>, vector<8x128xf32> -> vector<8x128xf32>
    %369 = arith.addf %367, %368 : vector<8x128xf32>
    %370 = vector.extract_strided_slice %369 {offsets = [0, 0], sizes = [8, 96], strides = [1, 1]} : vector<8x128xf32> to vector<8x96xf32>
    %371 = arith.negf %370 : vector<8x96xf32>
    %372 = math.exp %371 : vector<8x96xf32>
    %cst_102 = arith.constant 1.000000e+00 : f32
    %373 = vector.broadcast %cst_102 : f32 to vector<8x96xf32>
    %374 = arith.addf %373, %372 : vector<8x96xf32>
    %375 = arith.divf %373, %374 : vector<8x96xf32>
    %376 = vector.extract_strided_slice %375 {offsets = [0, 0], sizes = [8, 32], strides = [1, 1]} : vector<8x96xf32> to vector<8x32xf32>
    %377 = vector.extract_strided_slice %375 {offsets = [0, 32], sizes = [8, 32], strides = [1, 1]} : vector<8x96xf32> to vector<8x32xf32>
    %378 = vector.extract_strided_slice %375 {offsets = [0, 64], sizes = [8, 32], strides = [1, 1]} : vector<8x96xf32> to vector<8x32xf32>
    %379 = vector.extract_strided_slice %369 {offsets = [0, 96], sizes = [8, 32], strides = [1, 1]} : vector<8x128xf32> to vector<8x32xf32>
    %380 = math.tanh %379 : vector<8x32xf32>
    %381 = arith.mulf %377, %361 : vector<8x32xf32>
    %382 = arith.mulf %376, %380 : vector<8x32xf32>
    %383 = arith.addf %381, %382 : vector<8x32xf32>
    %384 = math.tanh %383 : vector<8x32xf32>
    %385 = arith.mulf %378, %384 : vector<8x32xf32>
    %c7_i32_103 = arith.constant 7 : i32
    %c8_i32_104 = arith.constant 8 : i32
    %386 = arith.muli %c7_i32_103, %c8_i32_104 : i32
    %387 = tpu.assume_multiple %386, 8 : i32
    %388 = arith.index_cast %387 : i32 to index
    %c0_105 = arith.constant 0 : index
    %389 = vector.load %arg12[%388, %c0_105] : memref<64x128xf32, #tpu.memory_space<vmem>>, vector<8x128xf32>
    %cst_106 = arith.constant dense<0.000000e+00> : vector<8x128xf32>
    %390 = tpu.matmul %385, %229, %cst_106 {dimension_numbers = #tpu.dot_dimension_numbers<[1], [0], [0], [1], [0, 0, 1, 1], [], []>} : vector<8x32xf32>, vector<32x128xf32>, vector<8x128xf32> -> vector<8x128xf32>
    %391 = arith.addf %389, %390 : vector<8x128xf32>
    %392 = vector.extract_strided_slice %391 {offsets = [0, 0], sizes = [8, 96], strides = [1, 1]} : vector<8x128xf32> to vector<8x96xf32>
    %393 = arith.negf %392 : vector<8x96xf32>
    %394 = math.exp %393 : vector<8x96xf32>
    %cst_107 = arith.constant 1.000000e+00 : f32
    %395 = vector.broadcast %cst_107 : f32 to vector<8x96xf32>
    %396 = arith.addf %395, %394 : vector<8x96xf32>
    %397 = arith.divf %395, %396 : vector<8x96xf32>
    %398 = vector.extract_strided_slice %397 {offsets = [0, 0], sizes = [8, 32], strides = [1, 1]} : vector<8x96xf32> to vector<8x32xf32>
    %399 = vector.extract_strided_slice %397 {offsets = [0, 32], sizes = [8, 32], strides = [1, 1]} : vector<8x96xf32> to vector<8x32xf32>
    %400 = vector.extract_strided_slice %397 {offsets = [0, 64], sizes = [8, 32], strides = [1, 1]} : vector<8x96xf32> to vector<8x32xf32>
    %401 = vector.extract_strided_slice %391 {offsets = [0, 96], sizes = [8, 32], strides = [1, 1]} : vector<8x128xf32> to vector<8x32xf32>
    %402 = math.tanh %401 : vector<8x32xf32>
    %403 = arith.mulf %399, %383 : vector<8x32xf32>
    %404 = arith.mulf %398, %402 : vector<8x32xf32>
    %405 = arith.addf %403, %404 : vector<8x32xf32>
    %406 = math.tanh %405 : vector<8x32xf32>
    %407 = arith.mulf %400, %406 : vector<8x32xf32>
    %c8_i32_108 = arith.constant 8 : i32
    %c0_109 = arith.constant 0 : index
    %c0_110 = arith.constant 0 : index
    %408 = vector.load %arg8[%c0_109, %c0_110] : memref<32x128xf32, #tpu.memory_space<vmem>>, vector<32x128xf32>
    %cst_111 = arith.constant dense<0.000000e+00> : vector<8x128xf32>
    %409 = tpu.matmul %407, %408, %cst_111 {dimension_numbers = #tpu.dot_dimension_numbers<[1], [0], [0], [1], [0, 0, 1, 1], [], []>} : vector<8x32xf32>, vector<32x128xf32>, vector<8x128xf32> -> vector<8x128xf32>
    %c0_112 = arith.constant 0 : index
    %c0_113 = arith.constant 0 : index
    %410 = vector.load %arg9[%c0_112, %c0_113] : memref<1x128xf32, #tpu.memory_space<vmem>>, vector<1x128xf32>
    %411 = vector.broadcast %410 : vector<1x128xf32> to vector<8x128xf32>
    %412 = arith.addf %409, %411 : vector<8x128xf32>
    %c0_114 = arith.constant 0 : index
    %c0_115 = arith.constant 0 : index
    %413 = vector.load %arg10[%c0_114, %c0_115] : memref<8x128xf32, #tpu.memory_space<vmem>>, vector<8x128xf32>
    tpu.vector_store %arg10[%c0_114, %c0_115], %412 {strides = array<i32>} : memref<8x128xf32, #tpu.memory_space<vmem>>, vector<8x128xf32>,
    return
  }
  func.func @transform_0(%arg0: i32) -> (i32, i32, i32) {
    %c0_i32 = arith.constant 0 : i32
    %c0_i32_0 = arith.constant 0 : i32
    %c0_i32_1 = arith.constant 0 : i32
    return %c0_i32, %arg0, %c0_i32_0 : i32, i32, i32
  }
  func.func @transform_1(%arg0: i32) -> (i32, i32) {
    %c0_i32 = arith.constant 0 : i32
    %c0_i32_0 = arith.constant 0 : i32
    %c0_i32_1 = arith.constant 0 : i32
    return %c0_i32, %c0_i32_0 : i32, i32
  }
  func.func @transform_2(%arg0: i32) -> (i32, i32) {
    %c0_i32 = arith.constant 0 : i32
    %c0_i32_0 = arith.constant 0 : i32
    %c0_i32_1 = arith.constant 0 : i32
    return %c0_i32, %c0_i32_0 : i32, i32
  }
  func.func @transform_3(%arg0: i32) -> (i32, i32) {
    %c0_i32 = arith.constant 0 : i32
    %c0_i32_0 = arith.constant 0 : i32
    %c0_i32_1 = arith.constant 0 : i32
    return %c0_i32, %c0_i32_0 : i32, i32
  }
  func.func @transform_4(%arg0: i32) -> (i32, i32) {
    %c0_i32 = arith.constant 0 : i32
    %c0_i32_0 = arith.constant 0 : i32
    %c0_i32_1 = arith.constant 0 : i32
    return %c0_i32, %c0_i32_0 : i32, i32
  }
  func.func @transform_5(%arg0: i32) -> (i32, i32) {
    %c0_i32 = arith.constant 0 : i32
    %c0_i32_0 = arith.constant 0 : i32
    %c0_i32_1 = arith.constant 0 : i32
    return %c0_i32, %c0_i32_0 : i32, i32
  }
  func.func @transform_6(%arg0: i32) -> (i32, i32) {
    %c0_i32 = arith.constant 0 : i32
    %c0_i32_0 = arith.constant 0 : i32
    %c0_i32_1 = arith.constant 0 : i32
    return %c0_i32, %c0_i32_0 : i32, i32
  }
  func.func @transform_7(%arg0: i32) -> (i32, i32) {
    %c0_i32 = arith.constant 0 : i32
    %c0_i32_0 = arith.constant 0 : i32
    %c0_i32_1 = arith.constant 0 : i32
    return %c0_i32, %c0_i32_0 : i32, i32
  }
  func.func @transform_8(%arg0: i32) -> (i32, i32) {
    %c0_i32 = arith.constant 0 : i32
    %c0_i32_0 = arith.constant 0 : i32
    %c0_i32_1 = arith.constant 0 : i32
    return %c0_i32, %c0_i32_0 : i32, i32
  }
  func.func @transform_9(%arg0: i32) -> (i32, i32) {
    %c0_i32 = arith.constant 0 : i32
    %c0_i32_0 = arith.constant 0 : i32
    return %arg0, %c0_i32 : i32, i32
  }
}

</mosaic_0001>

<bundles_post_ra>
// kernel: lstm_forward_pallas.1
= control target key start
LH: loop header
LB: loop body
LE: loop exit
PB: predicated region body
PF: predicated region fallthrough
CT: control target
= control target key end

     0   :  { %vm49_vm0 = vcmask 130048   ;;  %v3278_v3 = vmov 0.0|0.0   ;;  %vm3279_vm1 = vmmov 0   ;;  %v3280_v4 = vmov 0.0   ;;  %s3720_s1 = inlined_call_operand.vmem [shape: f32[16,128], index: 1, kind: input, shape index: {}]   ;;  %s3721_s0 = inlined_call_operand.vmem [shape: f32[8,8,16], index: 0, kind: input, shape index: {}]   ;;  %s3722_s2 = inlined_call_operand.vmem [shape: f32[32,128], index: 2, kind: input, shape index: {}]   ;;  %s3723_s3 = inlined_call_operand.vmem [shape: f32[1,128], index: 3, kind: input, shape index: {}]   ;;  %s3724_s4 = inlined_call_operand.vmem [shape: f32[32,128], index: 4, kind: input, shape index: {}]   ;;  %s3725_s5 = inlined_call_operand.vmem [shape: f32[32,128], index: 5, kind: input, shape index: {}]   ;;  %s3726_s6 = inlined_call_operand.vmem [shape: f32[1,128], index: 6, kind: input, shape index: {}]   ;;  %s3727_s7 = inlined_call_operand.vmem [shape: f32[32,128], index: 7, kind: input, shape index: {}]   ;;  %s3728_s8 = inlined_call_operand.vmem [shape: f32[1,128], index: 8, kind: input, shape index: {}]   ;;  %s3729_s9 = inlined_call_operand.vmem [shape: f32[8,128], index: 9, kind: output, shape index: {}]  }
   0x1   :  { %v40_v0 = vld [vmem:[%s3720_s1] sm:$0xff]  ;;  %v41_v1 = vld [vmem:[%s3720_s1 + $0x8] sm:$0xff]  ;;  %3016 = vmatprep.subr.bf16.mxu1 %v3278_v3  ;;  %2780 = vmatprep.mubr.msk.f32.mxu1 %vm3279_vm1, %v3280_v4  ;;  %v34_v10 = vld [vmem:[%s3721_s0 + $0x10] sm:$0xff]  ;;  %vm197_vm2 = vcmask 261120  }
   0x2   :  { %v32_v2 = vld [vmem:[%s3721_s0] sm:$0xff]  ;;  %v2970_v5 = vpack.c.bf16 %v41_v1, %v40_v0  ;;  %v188_v7 = vld [vmem:[%s3722_s2 + $0x8] sm:$0xff]  ;;  %v189_v11 = vld [vmem:[%s3722_s2 + $0x10] sm:$0xff] }
   0x3   :  { %2683 = vmatprep.mubr.msk.f32.mxu0 %vm49_vm0, %v32_v2  ;;  %v187_v6 = vld [vmem:[%s3722_s2] sm:$0xff]  ;;  %v33_v8 = vld [vmem:[%s3721_s0 + $0x8] sm:$0xff]  ;;  %v190_v12 = vld [vmem:[%s3722_s2 + $0x18] sm:$0xff] }
   0x4   :  { %2971 = vmatprep.subr.bf16.mxu0 %v2970_v5  ;;  %v3355_v9 = vpack.c.bf16 %v188_v7, %v187_v6  ;;  %v35_v13 = vld [vmem:[%s3721_s0 + $0x18] sm:$0xff]  ;;  %v3373_v14 = vpack.c.bf16 %v190_v12, %v189_v11  ;;  %v36_v15 = vld [vmem:[%s3721_s0 + $0x20] sm:$0xff]  ;;  %v37_v16 = vld [vmem:[%s3721_s0 + $0x28] sm:$0xff] }
   0x5   :  { %2973 = vmatpush3.bf16.msra.mxu0 %v2970_v5  ;;  %v38_v17 = vld [vmem:[%s3721_s0 + $0x30] sm:$0xff]  ;;  %v39_v18 = vld [vmem:[%s3721_s0 + $0x38] sm:$0xff]  ;;  %v2494_v19 = vld [vmem:[%s3723_s3] ss:$0 sm:$0xff]  ;;  %s3281_s0 = smov 32  }
   0x6   :  { %2974 = vmatprep.subr.bf16.mxu0 %v3278_v3  ;;  %v191_v49 = vld [vmem:[%s3724_s4] sm:$0xff]  ;;  %v192_v50 = vld [vmem:[%s3724_s4 + $0x8] sm:$0xff]  ;;  %v193_v51 = vld [vmem:[%s3724_s4 + $0x10] sm:$0xff] }
   0x7   :  { %v3428_v52 = vpack.c.bf16 %v192_v50, %v191_v49  ;;  %v194_v53 = vld [vmem:[%s3724_s4 + $0x18] sm:$0xff]  ;;  %s3282_s4 = smov 64  }
   0x8   :  { %2684 = vmatmul.mubr.msk.f32.vlgmr.msra.gmra.mrb[0].mxu0 %vm49_vm0, %v33_v8  ;;  %v3434_v54 = vpack.c.bf16 %v194_v53, %v193_v51 }
   0x9   :  { %2976 = vmatpush3.bf16.msra.mxu0 %v3355_v9  ;;  %2686 = vmatprep.mubr.msk.f32.mxu0 %vm49_vm0, %v34_v10 }
   0xa   :  { %2977 = vmatprep.subr.bf16.mxu0 %v3278_v3  ;;  %3018 = vmatpush3.bf16.msra.mxu1 %v3428_v52 }
   0xb   :  { %3019 = vmatprep.subr.bf16.mxu1 %v3278_v3 }
   0xc   :  { %2687 = vmatmul.mubr.msk.f32.gmra.mrb[2].mxu0 %vm49_vm0, %v35_v13 }
   0xd   :  { %2689 = vmatprep.mubr.msk.f32.mxu0 %vm49_vm0, %v36_v15  ;;  %2979 = vmatpush3.bf16.msra.mxu0 %v3373_v14 }
   0xe   :  { %2980 = vmatprep.subr.bf16.mxu0 %v3278_v3  ;;  %3021 = vmatpush3.bf16.msra.mxu1 %v3434_v54 }
   0xf   :  { %3028 = vmatprep.subr.bf16.mxu1 %v3278_v3 }
  0x10   :  { %2690 = vmatmul.mubr.msk.f32.gmra.mrb[4].mxu0 %vm49_vm0, %v37_v16 }
  0x11   :  { %2692 = vmatprep.mubr.msk.f32.mxu0 %vm49_vm0, %v38_v17 }
  0x14   :  { %2693 = vmatmul.mubr.msk.f32.gmra.mrb[6].mxu0 %vm49_vm0, %v39_v18 }
  0x15   :  { %2703 = vmatprep.mubr.msk.f32.mxu0 %vm3279_vm1, %v3280_v4 }
  0x18   :  { %2704 = vmatmul.mubr.f32.vlgmr.msra.gmra.mrb[8].mxu0 %v3280_v4 }
  0x19   :  { %2714 = vmatprep.mubr.msk.f32.mxu0 %vm3279_vm1, %v3280_v4  ;;  %2982 = vmatpush3.bf16.msra.mxu0 %v3428_v52 }
  0x1a   :  { %2983 = vmatprep.subr.bf16.mxu0 %v3278_v3 }
  0x1d   :  { %2985 = vmatpush3.bf16.msra.mxu0 %v3434_v54 }
  0x1e   :  { %2986 = vmatprep.subr.bf16.mxu0 %v3278_v3 }
  0xdb   :  { %v2685_v20 = vpop.f32.mrb[0].mxu0 }
  0xdc   :  { %v3403_v21 = vadd.f32 %v2685_v20, %v2494_v19  ;;  %v140_v22 = vpop.f32.mrb[1].mxu0 }
  0xdd   :  { %v141_v35 = vadd.f32 %v2494_v19, %v140_v22 }
  0xdf   :  { %v2688_v23 = vpop.f32.mrb[2].mxu0 }
  0xe0   :  { %v3405_v24 = vadd.f32 %v2688_v23, %v2494_v19  ;;  %v150_v25 = vpop.f32.mrb[3].mxu0 }
  0xe1   :  { %v3407_v26 = vadd.f32 %v2494_v19, %v150_v25 }
  0xe3   :  { %v2691_v27 = vpop.f32.mrb[4].mxu0 }
  0xe4   :  { %v3409_v28 = vadd.f32 %v2691_v27, %v2494_v19  ;;  %v160_v29 = vpop.f32.mrb[5].mxu0 }
  0xe5   :  { %v3411_v30 = vadd.f32 %v2494_v19, %v160_v29 }
  0xe7   :  { %v2694_v31 = vpop.f32.mrb[6].mxu0 }
  0xe8   :  { %v3413_v32 = vadd.f32 %v2694_v31, %v2494_v19  ;;  %v170_v33 = vpop.f32.mrb[7].mxu0 }
  0xe9   :  { %v3415_v34 = vadd.f32 %v2494_v19, %v170_v33 }
  0xeb   :  { %v267_v36 = vpop.f32.mrb[8].mxu0 }
  0xec   :  { %v271_v37 = vadd.f32 %v267_v36, %v141_v35  ;;  %v2705_v38 = vpop.f32.mrb[9].mxu0 }
  0xee   :  { %3150 = vtanh.f32 %v271_v37  ;;  %v2503_v40 = vmul.f32 -1.442695, %v271_v37 }
  0xf0   :  { %3152 = vpow2.f32 %v2503_v40 }
  0xf8   :  { %v3151_v39 = vpop.eup %3150 }
  0xf9   :  { %281 = vrot.lane.b32.xlu0 %v3151_v39, %s3281_s0 }
  0xfa   :  { %v3153_v41 = vpop.eup %3152 }
  0xfb   :  { %v275_v42 = vadd.f32 1.0, %v3153_v41 }
  0xfd   :  { %3154 = vrcp.f32 %v275_v42 }
 0x107   :  { %v3155_v43 = vpop.eup %3154 }
 0x108   :  { %v279_v46 = vmul.f32 0.0, %v3155_v43 }
 0x16b   :  { %v282_v44 = vpop.permute.xlu0 %281 }
 0x16c   :  { %v284_v45 = vmul.f32 %v3155_v43, %v282_v44 }
 0x16e   :  { %286 = vrot.lane.b32.xlu0 %v284_v45, %s3281_s0 }
 0x1e0   :  { %v287_v47 = vpop.permute.xlu0 %286 }
 0x1e1   :  { %v289_v48 = vadd.f32 %v287_v47, %v279_v46 }
 0x1e3   :  { %3156 = vtanh.f32 %v289_v48 }
 0x1ed   :  { %v3157_v55 = vpop.eup %3156 }
 0x1ee   :  { %292 = vrot.lane.b32.xlu1 %v3157_v55, %s3281_s0 }
 0x260   :  { %v293_v56 = vpop.permute.xlu1 %292 }
 0x261   :  { %v295_v57 = vmul.f32 %v3155_v43, %v293_v56 }
 0x263   :  { %303 = vrot.lane.b32.xlu1 %v295_v57, %s3282_s4 }
 0x2d5   :  { %v304_v58 = vpop.permute.xlu1 %303 }
 0x2d6   :  { %2715 = vmatmul.mubr.msk.f32.vlgmr.msra.gmra.mrb[10].mxu0 %vm197_vm2, %v304_v58 }
 0x2d7   :  { %2988 = vmatpush3.bf16.msra.mxu0 %v3355_v9  ;;  %2725 = vmatprep.mubr.msk.f32.mxu0 %vm3279_vm1, %v3280_v4 }
 0x2d8   :  { %2989 = vmatprep.subr.bf16.mxu0 %v3278_v3 }
 0x2db   :  { %2991 = vmatpush3.bf16.msra.mxu0 %v3373_v14 }
 0x2dc   :  { %2992 = vmatprep.subr.bf16.mxu0 %v3278_v3 }
 0x2de   :  { %2726 = vmatmul.mubr.msk.f32.vlgmr.msra.gmra.mrb[12].mxu0 %vm197_vm2, %v304_v58 }
 0x2df   :  { %2994 = vmatpush3.bf16.msra.mxu0 %v3428_v52  ;;  %2736 = vmatprep.mubr.msk.f32.mxu0 %vm3279_vm1, %v3280_v4 }
 0x2e0   :  { %2995 = vmatprep.subr.bf16.mxu0 %v3278_v3 }
 0x2e3   :  { %2997 = vmatpush3.bf16.msra.mxu0 %v3434_v54 }
 0x2e4   :  { %2998 = vmatprep.subr.bf16.mxu0 %v3278_v3 }
 0x3a9   :  { %v3459_v59 = vpop.f32.mrb[10].mxu0 }
 0x3aa   :  { %v2716_v60 = vpop.f32.mrb[11].mxu0 }
 0x3b1   :  { %v446_v61 = vpop.f32.mrb[12].mxu0 }
 0x3b2   :  { %v450_v62 = vadd.f32 %v446_v61, %v3403_v21  ;;  %v2727_v63 = vpop.f32.mrb[13].mxu0 }
 0x3b4   :  { %3158 = vtanh.f32 %v450_v62  ;;  %v2507_v1 = vmul.f32 -1.442695, %v450_v62 }
 0x3b6   :  { %3160 = vpow2.f32 %v2507_v1 }
 0x3be   :  { %v3159_v0 = vpop.eup %3158 }
 0x3bf   :  { %460 = vrot.lane.b32.xlu0 %v3159_v0, %s3281_s0 }
 0x3c0   :  { %v3161_v2 = vpop.eup %3160 }
 0x3c1   :  { %v454_v5 = vadd.f32 1.0, %v3161_v2 }
 0x3c3   :  { %3162 = vrcp.f32 %v454_v5 }
 0x3cd   :  { %v3163_v6 = vpop.eup %3162 }
 0x3ce   :  { %v458_v10 = vmul.f32 %v3163_v6, %v289_v48 }
 0x431   :  { %v461_v7 = vpop.permute.xlu0 %460 }
 0x432   :  { %v463_v8 = vmul.f32 %v3163_v6, %v461_v7 }
 0x434   :  { %465 = vrot.lane.b32.xlu1 %v463_v8, %s3281_s0 }
 0x4a6   :  { %v466_v11 = vpop.permute.xlu1 %465 }
 0x4a7   :  { %v468_v12 = vadd.f32 %v466_v11, %v458_v10 }
 0x4a9   :  { %3164 = vtanh.f32 %v468_v12 }
 0x4b3   :  { %v3165_v13 = vpop.eup %3164 }
 0x4b4   :  { %471 = vrot.lane.b32.xlu0 %v3165_v13, %s3281_s0 }
 0x526   :  { %v472_v15 = vpop.permute.xlu0 %471 }
 0x527   :  { %v474_v16 = vmul.f32 %v3163_v6, %v472_v15 }
 0x529   :  { %476 = vrot.lane.b32.xlu1 %v474_v16, %s3282_s4 }
 0x59b   :  { %v477_v17 = vpop.permute.xlu1 %476 }
 0x59c   :  { %2737 = vmatmul.mubr.msk.f32.vlgmr.msra.gmra.mrb[14].mxu0 %vm197_vm2, %v477_v17 }
 0x59d   :  { %3000 = vmatpush3.bf16.msra.mxu0 %v3355_v9  ;;  %2747 = vmatprep.mubr.msk.f32.mxu0 %vm3279_vm1, %v3280_v4 }
 0x59e   :  { %3001 = vmatprep.subr.bf16.mxu0 %v3278_v3 }
 0x5a1   :  { %3003 = vmatpush3.bf16.msra.mxu0 %v3373_v14 }
 0x5a2   :  { %3004 = vmatprep.subr.bf16.mxu0 %v3278_v3 }
 0x5a4   :  { %2748 = vmatmul.mubr.msk.f32.vlgmr.msra.gmra.mrb[16].mxu0 %vm197_vm2, %v477_v17 }
 0x5a5   :  { %3006 = vmatpush3.bf16.msra.mxu0 %v3428_v52  ;;  %2758 = vmatprep.mubr.msk.f32.mxu0 %vm3279_vm1, %v3280_v4 }
 0x5a6   :  { %3007 = vmatprep.subr.bf16.mxu0 %v3278_v3 }
 0x5a9   :  { %3009 = vmatpush3.bf16.msra.mxu0 %v3434_v54 }
 0x5aa   :  { %3010 = vmatprep.subr.bf16.mxu0 %v3278_v3 }
 0x66f   :  { %v3480_v18 = vpop.f32.mrb[14].mxu0 }
 0x670   :  { %v2738_v19 = vpop.f32.mrb[15].mxu0 }
 0x677   :  { %v620_v20 = vpop.f32.mrb[16].mxu0 }
 0x678   :  { %v624_v21 = vadd.f32 %v620_v20, %v3407_v26  ;;  %v2749_v22 = vpop.f32.mrb[17].mxu0 }
 0x67a   :  { %3166 = vtanh.f32 %v624_v21  ;;  %v2510_v25 = vmul.f32 -1.442695, %v624_v21 }
 0x67c   :  { %3168 = vpow2.f32 %v2510_v25 }
 0x684   :  { %v3167_v23 = vpop.eup %3166 }
 0x685   :  { %634 = vrot.lane.b32.xlu0 %v3167_v23, %s3281_s0 }
 0x686   :  { %v3169_v27 = vpop.eup %3168 }
 0x687   :  { %v628_v29 = vadd.f32 1.0, %v3169_v27 }
 0x689   :  { %3170 = vrcp.f32 %v628_v29 }
 0x693   :  { %v3171_v31 = vpop.eup %3170 }
 0x694   :  { %v632_v36 = vmul.f32 %v3171_v31, %v468_v12 }
 0x6f7   :  { %v635_v33 = vpop.permute.xlu0 %634 }
 0x6f8   :  { %v637_v35 = vmul.f32 %v3171_v31, %v635_v33 }
 0x6fa   :  { %639 = vrot.lane.b32.xlu1 %v637_v35, %s3281_s0 }
 0x76c   :  { %v640_v37 = vpop.permute.xlu1 %639 }
 0x76d   :  { %v642_v38 = vadd.f32 %v640_v37, %v632_v36 }
 0x76f   :  { %3172 = vtanh.f32 %v642_v38 }
 0x779   :  { %v3173_v26 = vpop.eup %3172 }
 0x77a   :  { %645 = vrot.lane.b32.xlu0 %v3173_v26, %s3281_s0 }
 0x7ec   :  { %v646_v39 = vpop.permute.xlu0 %645 }
 0x7ed   :  { %v648_v40 = vmul.f32 %v3171_v31, %v646_v39 }
 0x7ef   :  { %650 = vrot.lane.b32.xlu1 %v648_v40, %s3282_s4 }
 0x861   :  { %v651_v41 = vpop.permute.xlu1 %650 }
 0x862   :  { %2759 = vmatmul.mubr.msk.f32.vlgmr.msra.gmra.mrb[18].mxu0 %vm197_vm2, %v651_v41 }
 0x863   :  { %3012 = vmatpush3.bf16.msra.mxu0 %v3355_v9  ;;  %2769 = vmatprep.mubr.msk.f32.mxu0 %vm3279_vm1, %v3280_v4 }
 0x864   :  { %3013 = vmatprep.subr.bf16.mxu0 %v3278_v3 }
 0x867   :  { %3015 = vmatpush3.bf16.msra.mxu0 %v3373_v14 }
 0x868   :  { %3022 = vmatprep.subr.bf16.mxu0 %v3278_v3 }
 0x86a   :  { %2770 = vmatmul.mubr.msk.f32.vlgmr.msra.gmra.mrb[20].mxu0 %vm197_vm2, %v651_v41 }
 0x86b   :  { %3024 = vmatpush3.bf16.msra.mxu0 %v3355_v9  ;;  %2791 = vmatprep.mubr.msk.f32.mxu0 %vm3279_vm1, %v3280_v4 }
 0x86c   :  { %3025 = vmatprep.subr.bf16.mxu0 %v3278_v3 }
 0x86f   :  { %3027 = vmatpush3.bf16.msra.mxu0 %v3373_v14 }
 0x870   :  { %3034 = vmatprep.subr.bf16.mxu0 %v3278_v3 }
 0x935   :  { %v3501_v42 = vpop.f32.mrb[18].mxu0 }
 0x936   :  { %v2760_v43 = vpop.f32.mrb[19].mxu0 }
 0x93d   :  { %v794_v44 = vpop.f32.mrb[20].mxu0 }
 0x93e   :  { %v798_v45 = vadd.f32 %v794_v44, %v3405_v24  ;;  %v2771_v46 = vpop.f32.mrb[21].mxu0 }
 0x940   :  { %3174 = vtanh.f32 %v798_v45  ;;  %v2513_v48 = vmul.f32 -1.442695, %v798_v45 }
 0x942   :  { %3176 = vpow2.f32 %v2513_v48 }
 0x94a   :  { %v3175_v47 = vpop.eup %3174 }
 0x94b   :  { %808 = vrot.lane.b32.xlu0 %v3175_v47, %s3281_s0 }
 0x94c   :  { %v3177_v49 = vpop.eup %3176 }
 0x94d   :  { %v802_v50 = vadd.f32 1.0, %v3177_v49 }
 0x94f   :  { %3178 = vrcp.f32 %v802_v50 }
 0x959   :  { %v3179_v51 = vpop.eup %3178 }
 0x95a   :  { %v806_v56 = vmul.f32 %v3179_v51, %v642_v38 }
 0x9bd   :  { %v809_v53 = vpop.permute.xlu0 %808 }
 0x9be   :  { %v811_v55 = vmul.f32 %v3179_v51, %v809_v53 }
 0x9c0   :  { %813 = vrot.lane.b32.xlu1 %v811_v55, %s3281_s0 }
 0xa32   :  { %v814_v57 = vpop.permute.xlu1 %813 }
 0xa33   :  { %v816_v58 = vadd.f32 %v814_v57, %v806_v56 }
 0xa35   :  { %3180 = vtanh.f32 %v816_v58 }
 0xa3f   :  { %v3181_v24 = vpop.eup %3180 }
 0xa40   :  { %819 = vrot.lane.b32.xlu0 %v3181_v24, %s3281_s0 }
 0xab2   :  { %v820_v60 = vpop.permute.xlu0 %819 }
 0xab3   :  { %v822_v61 = vmul.f32 %v3179_v51, %v820_v60 }
 0xab5   :  { %824 = vrot.lane.b32.xlu1 %v822_v61, %s3282_s4 }
 0xb27   :  { %v825_v62 = vpop.permute.xlu1 %824 }
 0xb28   :  { %2781 = vmatmul.mubr.msk.f32.vlgmr.msra.gmra.mrb[0].mxu1 %vm197_vm2, %v825_v62  ;;  %2792 = vmatmul.mubr.msk.f32.vlgmr.msra.gmra.mrb[22].mxu0 %vm197_vm2, %v825_v62 }
 0xb29   :  { %3030 = vmatpush3.bf16.msra.mxu1 %v3428_v52  ;;  %3036 = vmatpush3.bf16.msra.mxu0 %v3355_v9 }
 0xb2a   :  { %3031 = vmatprep.subr.bf16.mxu1 %v3278_v3  ;;  %3037 = vmatprep.subr.bf16.mxu0 %v3278_v3 }
 0xb2b   :  { %2802 = vmatprep.mubr.msk.f32.mxu1 %vm3279_vm1, %v3280_v4  ;;  %2813 = vmatprep.mubr.msk.f32.mxu0 %vm3279_vm1, %v3280_v4 }
 0xb2d   :  { %3033 = vmatpush3.bf16.msra.mxu1 %v3434_v54  ;;  %3039 = vmatpush3.bf16.msra.mxu0 %v3373_v14 }
 0xb2e   :  { %3040 = vmatprep.subr.bf16.mxu1 %v3278_v3  ;;  %3046 = vmatprep.subr.bf16.mxu0 %v3278_v3 }
 0xbfb   :  { %v968_v63 = vpop.f32.mrb[22].mxu0 }
 0xbfc   :  { %v972_v0 = vadd.f32 %v968_v63, %v3411_v30  ;;  %v2793_v1 = vpop.f32.mrb[23].mxu0 }
 0xbfe   :  { %3182 = vtanh.f32 %v972_v0  ;;  %v2516_v5 = vmul.f32 -1.442695, %v972_v0 }
 0xc00   :  { %3184 = vpow2.f32 %v2516_v5 }
 0xc08   :  { %v3183_v2 = vpop.eup %3182 }
 0xc09   :  { %982 = vrot.lane.b32.xlu0 %v3183_v2, %s3281_s0 }
 0xc0a   :  { %v3185_v6 = vpop.eup %3184 }
 0xc0b   :  { %v976_v7 = vadd.f32 1.0, %v3185_v6 }
 0xc0d   :  { %3186 = vrcp.f32 %v976_v7 }
 0xc17   :  { %v3187_v8 = vpop.eup %3186 }
 0xc18   :  { %v980_v12 = vmul.f32 %v3187_v8, %v816_v58 }
 0xc7b   :  { %v983_v10 = vpop.permute.xlu0 %982 }
 0xc7c   :  { %v985_v11 = vmul.f32 %v3187_v8, %v983_v10  ;;  %v1596_v10 = vld [vmem:[%s3725_s5] sm:$0xff] }
 0xc7e   :  { %987 = vrot.lane.b32.xlu1 %v985_v11, %s3281_s0  ;;  %v1597_v11 = vld [vmem:[%s3725_s5 + $0x8] sm:$0xff] }
 0xcf0   :  { %v988_v13 = vpop.permute.xlu1 %987 }
 0xcf1   :  { %v990_v15 = vadd.f32 %v988_v13, %v980_v12  ;;  %v3586_v12 = vpack.c.bf16 %v1597_v11, %v1596_v10  ;;  %v1598_v13 = vld [vmem:[%s3725_s5 + $0x10] sm:$0xff] }
 0xcf3   :  { %3188 = vtanh.f32 %v990_v15 }
 0xcfd   :  { %v3189_v30 = vpop.eup %3188 }
 0xcfe   :  { %993 = vrot.lane.b32.xlu0 %v3189_v30, %s3281_s0 }
 0xd70   :  { %v994_v16 = vpop.permute.xlu0 %993 }
 0xd71   :  { %v996_v17 = vmul.f32 %v3187_v8, %v994_v16 }
 0xd73   :  { %998 = vrot.lane.b32.xlu1 %v996_v17, %s3282_s4  ;;  %v3613_v17 = vld [vmem:[%s3726_s6] ss:$0 sm:$0xff] }
 0xde5   :  { %v999_v19 = vpop.permute.xlu1 %998 }
 0xde6   :  { %2803 = vmatmul.mubr.msk.f32.vlgmr.msra.gmra.mrb[2].mxu1 %vm197_vm2, %v999_v19  ;;  %2814 = vmatmul.mubr.msk.f32.vlgmr.msra.gmra.mrb[24].mxu0 %vm197_vm2, %v999_v19  ;;  %v374_v19 = vadd.f32 %v3613_v17, %v3459_v59 }
 0xde7   :  { %3042 = vmatpush3.bf16.msra.mxu1 %v3428_v52  ;;  %3048 = vmatpush3.bf16.msra.mxu0 %v3355_v9 }
 0xde8   :  { %3043 = vmatprep.subr.bf16.mxu1 %v3278_v3  ;;  %3049 = vmatprep.subr.bf16.mxu0 %v3278_v3 }
 0xde9   :  { %2824 = vmatprep.mubr.msk.f32.mxu1 %vm3279_vm1, %v3280_v4  ;;  %2835 = vmatprep.mubr.msk.f32.mxu0 %vm3279_vm1, %v3280_v4 }
 0xdeb   :  { %3045 = vmatpush3.bf16.msra.mxu1 %v3434_v54  ;;  %3051 = vmatpush3.bf16.msra.mxu0 %v3373_v14 }
 0xdec   :  { %3052 = vmatprep.subr.bf16.mxu1 %v3278_v3  ;;  %3058 = vmatprep.subr.bf16.mxu0 %v3278_v3 }
 0xeb9   :  { %v1142_v20 = vpop.f32.mrb[24].mxu0 }
 0xeba   :  { %v1146_v21 = vadd.f32 %v1142_v20, %v3409_v28  ;;  %v2815_v22 = vpop.f32.mrb[25].mxu0 }
 0xebc   :  { %3190 = vtanh.f32 %v1146_v21  ;;  %v2519_v25 = vmul.f32 -1.442695, %v1146_v21 }
 0xebe   :  { %3192 = vpow2.f32 %v2519_v25 }
 0xec6   :  { %v3191_v23 = vpop.eup %3190 }
 0xec7   :  { %1156 = vrot.lane.b32.xlu0 %v3191_v23, %s3281_s0 }
 0xec8   :  { %v3193_v27 = vpop.eup %3192 }
 0xec9   :  { %v1150_v29 = vadd.f32 1.0, %v3193_v27 }
 0xecb   :  { %3194 = vrcp.f32 %v1150_v29 }
 0xed5   :  { %v3195_v31 = vpop.eup %3194 }
 0xed6   :  { %v1154_v36 = vmul.f32 %v3195_v31, %v990_v15  ;;  %v1599_v15 = vld [vmem:[%s3725_s5 + $0x18] sm:$0xff] }
 0xed7   :  { %v3596_v16 = vpack.c.bf16 %v1599_v15, %v1598_v13 }
 0xf39   :  { %v1157_v33 = vpop.permute.xlu0 %1156 }
 0xf3a   :  { %v1159_v35 = vmul.f32 %v3195_v31, %v1157_v33 }
 0xf3c   :  { %1161 = vrot.lane.b32.xlu1 %v1159_v35, %s3281_s0 }
 0xfae   :  { %v1162_v37 = vpop.permute.xlu1 %1161 }
 0xfaf   :  { %v1164_v38 = vadd.f32 %v1162_v37, %v1154_v36 }
 0xfb1   :  { %3196 = vtanh.f32 %v1164_v38 }
 0xfbb   :  { %v3197_v28 = vpop.eup %3196 }
 0xfbc   :  { %1167 = vrot.lane.b32.xlu0 %v3197_v28, %s3281_s0 }
0x102e   :  { %v1168_v26 = vpop.permute.xlu0 %1167 }
0x102f   :  { %v1170_v39 = vmul.f32 %v3195_v31, %v1168_v26 }
0x1031   :  { %1172 = vrot.lane.b32.xlu1 %v1170_v39, %s3282_s4 }
0x10a3   :  { %v1173_v40 = vpop.permute.xlu1 %1172 }
0x10a4   :  { %2825 = vmatmul.mubr.msk.f32.vlgmr.msra.gmra.mrb[4].mxu1 %vm197_vm2, %v1173_v40  ;;  %2836 = vmatmul.mubr.msk.f32.vlgmr.msra.gmra.mrb[26].mxu0 %vm197_vm2, %v1173_v40  ;;  %v547_v40 = vadd.f32 %v3613_v17, %v3480_v18 }
0x10a5   :  { %3054 = vmatpush3.bf16.msra.mxu1 %v3428_v52  ;;  %3060 = vmatpush3.bf16.msra.mxu0 %v3355_v9 }
0x10a6   :  { %3055 = vmatprep.subr.bf16.mxu1 %v3278_v3  ;;  %3061 = vmatprep.subr.bf16.mxu0 %v3278_v3 }
0x10a7   :  { %2846 = vmatprep.mubr.msk.f32.mxu1 %vm3279_vm1, %v3280_v4  ;;  %2857 = vmatprep.mubr.msk.f32.mxu0 %vm3279_vm1, %v3280_v4 }
0x10a9   :  { %3057 = vmatpush3.bf16.msra.mxu1 %v3434_v54  ;;  %3063 = vmatpush3.bf16.msra.mxu0 %v3373_v14 }
0x10aa   :  { %3064 = vmatprep.subr.bf16.mxu1 %v3278_v3  ;;  %3118 = vmatprep.subr.bf16.mxu0 %v3278_v3 }
0x1177   :  { %v1316_v41 = vpop.f32.mrb[26].mxu0 }
0x1178   :  { %v1320_v9 = vadd.f32 %v1316_v41, %v3415_v34  ;;  %v2837_v43 = vpop.f32.mrb[27].mxu0 }
0x117a   :  { %3198 = vtanh.f32 %v1320_v9  ;;  %v2522_v45 = vmul.f32 -1.442695, %v1320_v9 }
0x117c   :  { %3200 = vpow2.f32 %v2522_v45 }
0x1184   :  { %v3199_v44 = vpop.eup %3198 }
0x1185   :  { %1330 = vrot.lane.b32.xlu0 %v3199_v44, %s3281_s0 }
0x1186   :  { %v3201_v46 = vpop.eup %3200 }
0x1187   :  { %v1324_v47 = vadd.f32 1.0, %v3201_v46 }
0x1189   :  { %3202 = vrcp.f32 %v1324_v47 }
0x1193   :  { %v3203_v48 = vpop.eup %3202 }
0x1194   :  { %v1328_v50 = vmul.f32 %v3203_v48, %v1164_v38 }
0x11f7   :  { %v1331_v49 = vpop.permute.xlu0 %1330 }
0x11f8   :  { %v1333_v14 = vmul.f32 %v3203_v48, %v1331_v49 }
0x11fa   :  { %1335 = vrot.lane.b32.xlu1 %v1333_v14, %s3281_s0 }
0x126c   :  { %v1336_v51 = vpop.permute.xlu1 %1335 }
0x126d   :  { %v1338_v53 = vadd.f32 %v1336_v51, %v1328_v50 }
0x126f   :  { %3204 = vtanh.f32 %v1338_v53 }
0x1279   :  { %v3205_v34 = vpop.eup %3204 }
0x127a   :  { %1341 = vrot.lane.b32.xlu0 %v3205_v34, %s3281_s0 }
0x12ec   :  { %v1342_v55 = vpop.permute.xlu0 %1341 }
0x12ed   :  { %v1344_v56 = vmul.f32 %v3203_v48, %v1342_v55 }
0x12ef   :  { %1346 = vrot.lane.b32.xlu1 %v1344_v56, %s3282_s4 }
0x1361   :  { %v1347_v57 = vpop.permute.xlu1 %1346 }
0x1362   :  { %2847 = vmatmul.mubr.msk.f32.vlgmr.msra.gmra.mrb[6].mxu1 %vm197_vm2, %v1347_v57  ;;  %2858 = vmatmul.mubr.msk.f32.vlgmr.msra.gmra.mrb[28].mxu0 %vm197_vm2, %v1347_v57  ;;  %v721_v57 = vadd.f32 %v3613_v17, %v3501_v42 }
0x1363   :  { %3066 = vmatpush3.bf16.msra.mxu1 %v3428_v52  ;;  %2868 = vmatprep.mubr.msk.f32.mxu1 %vm3279_vm1, %v3280_v4 }
0x1364   :  { %3067 = vmatprep.subr.bf16.mxu1 %v3278_v3  ;;  %2967 = vmatprep.mubr.msk.f32.mxu0 %vm3279_vm1, %v3280_v4 }
0x1367   :  { %3069 = vmatpush3.bf16.msra.mxu1 %v3434_v54 }
0x1368   :  { %3070 = vmatprep.subr.bf16.mxu1 %v3278_v3 }
0x1435   :  { %v1490_v58 = vpop.f32.mrb[28].mxu0 }
0x1436   :  { %v1494_v24 = vadd.f32 %v1490_v58, %v3413_v32  ;;  %v2859_v60 = vpop.f32.mrb[29].mxu0 }
0x1438   :  { %3206 = vtanh.f32 %v1494_v24  ;;  %v2525_v52 = vmul.f32 -1.442695, %v1494_v24 }
0x143a   :  { %3208 = vpow2.f32 %v2525_v52 }
0x1442   :  { %v3207_v61 = vpop.eup %3206 }
0x1443   :  { %1504 = vrot.lane.b32.xlu0 %v3207_v61, %s3281_s0 }
0x1444   :  { %v3209_v62 = vpop.eup %3208 }
0x1445   :  { %v1498_v63 = vadd.f32 1.0, %v3209_v62 }
0x1447   :  { %3210 = vrcp.f32 %v1498_v63 }
0x1451   :  { %v3211_v0 = vpop.eup %3210 }
0x1452   :  { %v1502_v54 = vmul.f32 %v3211_v0, %v1338_v53 }
0x14b5   :  { %v1505_v1 = vpop.permute.xlu0 %1504 }
0x14b6   :  { %v1507_v2 = vmul.f32 %v3211_v0, %v1505_v1 }
0x14b8   :  { %1509 = vrot.lane.b32.xlu1 %v1507_v2, %s3281_s0 }
0x152a   :  { %v1510_v5 = vpop.permute.xlu1 %1509 }
0x152b   :  { %v1512_v6 = vadd.f32 %v1510_v5, %v1502_v54 }
0x152d   :  { %3212 = vtanh.f32 %v1512_v6 }
0x1537   :  { %v3213_v32 = vpop.eup %3212 }
0x1538   :  { %1515 = vrot.lane.b32.xlu0 %v3213_v32, %s3281_s0 }
0x15aa   :  { %v1516_v7 = vpop.permute.xlu0 %1515 }
0x15ab   :  { %v1518_v8 = vmul.f32 %v3211_v0, %v1516_v7 }
0x15ad   :  { %1520 = vrot.lane.b32.xlu1 %v1518_v8, %s3282_s4 }
0x161f   :  { %v1521_v30 = vpop.permute.xlu1 %1520 }
0x1620   :  { %2869 = vmatmul.mubr.msk.f32.vlgmr.msra.gmra.mrb[8].mxu1 %vm197_vm2, %v1521_v30 }
0x1621   :  { %3072 = vmatpush3.bf16.msra.mxu1 %v3586_v12  ;;  %2879 = vmatprep.mubr.msk.f32.mxu1 %vm3279_vm1, %v3280_v4 }
0x1622   :  { %3073 = vmatprep.subr.bf16.mxu1 %v3278_v3 }
0x1625   :  { %3075 = vmatpush3.bf16.msra.mxu1 %v3596_v16 }
0x1626   :  { %3076 = vmatprep.subr.bf16.mxu1 %v3278_v3 }
0x1628   :  { %2880 = vmatmul.mubr.f32.vlgmr.msra.gmra.mrb[10].mxu1 %v3280_v4 }
0x1629   :  { %3078 = vmatpush3.bf16.msra.mxu1 %v3586_v12  ;;  %2890 = vmatprep.mubr.msk.f32.mxu1 %vm3279_vm1, %v3280_v4 }
0x162a   :  { %3079 = vmatprep.subr.bf16.mxu1 %v3278_v3 }
0x162d   :  { %3081 = vmatpush3.bf16.msra.mxu1 %v3596_v16 }
0x162e   :  { %3082 = vmatprep.subr.bf16.mxu1 %v3278_v3 }
0x16fb   :  { %v1667_v20 = vpop.f32.mrb[10].mxu1 }
0x16fc   :  { %v1671_v21 = vadd.f32 %v1667_v20, %v374_v19  ;;  %v2881_v22 = vpop.f32.mrb[11].mxu1 }
0x16fe   :  { %3214 = vtanh.f32 %v1671_v21  ;;  %v2527_v25 = vmul.f32 -1.442695, %v1671_v21 }
0x1700   :  { %3216 = vpow2.f32 %v2527_v25 }
0x1708   :  { %v3215_v23 = vpop.eup %3214 }
0x1709   :  { %1681 = vrot.lane.b32.xlu0 %v3215_v23, %s3281_s0 }
0x170a   :  { %v3217_v27 = vpop.eup %3216 }
0x170b   :  { %v1675_v29 = vadd.f32 1.0, %v3217_v27 }
0x170d   :  { %3218 = vrcp.f32 %v1675_v29 }
0x1717   :  { %v3219_v31 = vpop.eup %3218 }
0x1718   :  { %v1679_v36 = vmul.f32 0.0, %v3219_v31 }
0x177b   :  { %v1682_v33 = vpop.permute.xlu0 %1681 }
0x177c   :  { %v1684_v35 = vmul.f32 %v3219_v31, %v1682_v33 }
0x177e   :  { %1686 = vrot.lane.b32.xlu1 %v1684_v35, %s3281_s0 }
0x17f0   :  { %v1687_v37 = vpop.permute.xlu1 %1686 }
0x17f1   :  { %v1689_v59 = vadd.f32 %v1687_v37, %v1679_v36 }
0x17f3   :  { %3220 = vtanh.f32 %v1689_v59 }
0x17fd   :  { %v3221_v38 = vpop.eup %3220 }
0x17fe   :  { %1692 = vrot.lane.b32.xlu0 %v3221_v38, %s3281_s0 }
0x1870   :  { %v1693_v28 = vpop.permute.xlu0 %1692 }
0x1871   :  { %v1695_v26 = vmul.f32 %v3219_v31, %v1693_v28 }
0x1873   :  { %1698 = vrot.lane.b32.xlu1 %v1695_v26, %s3282_s4 }
0x18e5   :  { %v1699_v39 = vpop.permute.xlu1 %1698 }
0x18e6   :  { %2891 = vmatmul.mubr.msk.f32.vlgmr.msra.gmra.mrb[12].mxu1 %vm197_vm2, %v1699_v39 }
0x18e7   :  { %3084 = vmatpush3.bf16.msra.mxu1 %v3586_v12  ;;  %2901 = vmatprep.mubr.msk.f32.mxu1 %vm3279_vm1, %v3280_v4 }
0x18e8   :  { %3085 = vmatprep.subr.bf16.mxu1 %v3278_v3 }
0x18eb   :  { %3087 = vmatpush3.bf16.msra.mxu1 %v3596_v16 }
0x18ec   :  { %3088 = vmatprep.subr.bf16.mxu1 %v3278_v3 }
0x19b9   :  { %v1768_v41 = vpop.f32.mrb[12].mxu1 }
0x19ba   :  { %v1772_v9 = vadd.f32 %v1768_v41, %v547_v40  ;;  %v2892_v43 = vpop.f32.mrb[13].mxu1 }
0x19bc   :  { %3222 = vtanh.f32 %v1772_v9  ;;  %v2529_v45 = vmul.f32 -1.442695, %v1772_v9 }
0x19be   :  { %3224 = vpow2.f32 %v2529_v45 }
0x19c6   :  { %v3223_v44 = vpop.eup %3222 }
0x19c7   :  { %1782 = vrot.lane.b32.xlu0 %v3223_v44, %s3281_s0 }
0x19c8   :  { %v3225_v46 = vpop.eup %3224 }
0x19c9   :  { %v1776_v47 = vadd.f32 1.0, %v3225_v46 }
0x19cb   :  { %3226 = vrcp.f32 %v1776_v47 }
0x19d5   :  { %v3227_v48 = vpop.eup %3226 }
0x19d6   :  { %v1780_v50 = vmul.f32 %v3227_v48, %v1689_v59 }
0x1a39   :  { %v1783_v49 = vpop.permute.xlu0 %1782 }
0x1a3a   :  { %v1785_v14 = vmul.f32 %v3227_v48, %v1783_v49 }
0x1a3c   :  { %1787 = vrot.lane.b32.xlu1 %v1785_v14, %s3281_s0 }
0x1aae   :  { %v1788_v51 = vpop.permute.xlu1 %1787 }
0x1aaf   :  { %v1790_v18 = vadd.f32 %v1788_v51, %v1780_v50 }
0x1ab1   :  { %3228 = vtanh.f32 %v1790_v18 }
0x1abb   :  { %v3229_v53 = vpop.eup %3228 }
0x1abc   :  { %1793 = vrot.lane.b32.xlu0 %v3229_v53, %s3281_s0 }
0x1b2e   :  { %v1794_v34 = vpop.permute.xlu0 %1793 }
0x1b2f   :  { %v1796_v55 = vmul.f32 %v3227_v48, %v1794_v34 }
0x1b31   :  { %1799 = vrot.lane.b32.xlu1 %v1796_v55, %s3282_s4 }
0x1ba3   :  { %v1800_v56 = vpop.permute.xlu1 %1799 }
0x1ba4   :  { %2902 = vmatmul.mubr.msk.f32.vlgmr.msra.gmra.mrb[14].mxu1 %vm197_vm2, %v1800_v56 }
0x1ba5   :  { %3090 = vmatpush3.bf16.msra.mxu1 %v3586_v12  ;;  %2912 = vmatprep.mubr.msk.f32.mxu1 %vm3279_vm1, %v3280_v4 }
0x1ba6   :  { %3091 = vmatprep.subr.bf16.mxu1 %v3278_v3 }
0x1ba9   :  { %3093 = vmatpush3.bf16.msra.mxu1 %v3596_v16 }
0x1baa   :  { %3094 = vmatprep.subr.bf16.mxu1 %v3278_v3 }
0x1c77   :  { %v1869_v58 = vpop.f32.mrb[14].mxu1 }
0x1c78   :  { %v1873_v24 = vadd.f32 %v1869_v58, %v721_v57  ;;  %v2903_v60 = vpop.f32.mrb[15].mxu1 }
0x1c7a   :  { %3230 = vtanh.f32 %v1873_v24  ;;  %v2531_v52 = vmul.f32 -1.442695, %v1873_v24 }
0x1c7c   :  { %3232 = vpow2.f32 %v2531_v52 }
0x1c84   :  { %v3231_v61 = vpop.eup %3230 }
0x1c85   :  { %1883 = vrot.lane.b32.xlu0 %v3231_v61, %s3281_s0 }
0x1c86   :  { %v3233_v62 = vpop.eup %3232 }
0x1c87   :  { %v1877_v63 = vadd.f32 1.0, %v3233_v62 }
0x1c89   :  { %3234 = vrcp.f32 %v1877_v63 }
0x1c93   :  { %v3235_v0 = vpop.eup %3234 }
0x1c94   :  { %v1881_v54 = vmul.f32 %v3235_v0, %v1790_v18 }
0x1cf7   :  { %v1884_v1 = vpop.permute.xlu0 %1883 }
0x1cf8   :  { %v1886_v2 = vmul.f32 %v3235_v0, %v1884_v1 }
0x1cfa   :  { %1888 = vrot.lane.b32.xlu1 %v1886_v2, %s3281_s0 }
0x1d6c   :  { %v1889_v5 = vpop.permute.xlu1 %1888 }
0x1d6d   :  { %v1891_v42 = vadd.f32 %v1889_v5, %v1881_v54 }
0x1d6f   :  { %3236 = vtanh.f32 %v1891_v42 }
0x1d79   :  { %v3237_v6 = vpop.eup %3236 }
0x1d7a   :  { %1894 = vrot.lane.b32.xlu0 %v3237_v6, %s3281_s0 }
0x1dec   :  { %v1895_v32 = vpop.permute.xlu0 %1894 }
0x1ded   :  { %v1897_v7 = vmul.f32 %v3235_v0, %v1895_v32 }
0x1def   :  { %1900 = vrot.lane.b32.xlu1 %v1897_v7, %s3282_s4 }
0x1e61   :  { %v1901_v8 = vpop.permute.xlu1 %1900 }
0x1e62   :  { %2913 = vmatmul.mubr.msk.f32.vlgmr.msra.gmra.mrb[0].mxu1 %vm197_vm2, %v1901_v8 }
0x1e63   :  { %3096 = vmatpush3.bf16.msra.mxu1 %v3586_v12  ;;  %2923 = vmatprep.mubr.msk.f32.mxu1 %vm3279_vm1, %v3280_v4 }
0x1e64   :  { %3097 = vmatprep.subr.bf16.mxu1 %v3278_v3 }
0x1e67   :  { %3099 = vmatpush3.bf16.msra.mxu1 %v3596_v16 }
0x1e68   :  { %3100 = vmatprep.subr.bf16.mxu1 %v3278_v3 }
0x1f35   :  { %v1970_v10 = vpop.f32.mrb[0].mxu1 }
0x1f36   :  { %v3130_v11 = vadd.f32 %v3613_v17, %v1970_v10  ;;  %v2914_v13 = vpop.f32.mrb[1].mxu1 }
0x1f38   :  { %3238 = vtanh.f32 %v3130_v11  ;;  %v2533_v30 = vmul.f32 -1.442695, %v3130_v11 }
0x1f3a   :  { %3240 = vpow2.f32 %v2533_v30 }
0x1f42   :  { %v3239_v15 = vpop.eup %3238 }
0x1f43   :  { %1984 = vrot.lane.b32.xlu0 %v3239_v15, %s3281_s0 }
0x1f44   :  { %v3241_v19 = vpop.eup %3240 }
0x1f45   :  { %v1978_v20 = vadd.f32 1.0, %v3241_v19 }
0x1f47   :  { %3242 = vrcp.f32 %v1978_v20 }
0x1f51   :  { %v3243_v21 = vpop.eup %3242 }
0x1f52   :  { %v1982_v25 = vmul.f32 %v3243_v21, %v1891_v42 }
0x1fb5   :  { %v1985_v22 = vpop.permute.xlu0 %1984 }
0x1fb6   :  { %v1987_v23 = vmul.f32 %v3243_v21, %v1985_v22 }
0x1fb8   :  { %1989 = vrot.lane.b32.xlu1 %v1987_v23, %s3281_s0 }
0x202a   :  { %v1990_v27 = vpop.permute.xlu1 %1989 }
0x202b   :  { %v1992_v29 = vadd.f32 %v1990_v27, %v1982_v25 }
0x202d   :  { %3244 = vtanh.f32 %v1992_v29 }
0x2037   :  { %v3245_v31 = vpop.eup %3244 }
0x2038   :  { %1995 = vrot.lane.b32.xlu0 %v3245_v31, %s3281_s0 }
0x20aa   :  { %v1996_v33 = vpop.permute.xlu0 %1995 }
0x20ab   :  { %v1998_v35 = vmul.f32 %v3243_v21, %v1996_v33 }
0x20ad   :  { %2001 = vrot.lane.b32.xlu1 %v1998_v35, %s3282_s4 }
0x211f   :  { %v2002_v36 = vpop.permute.xlu1 %2001 }
0x2120   :  { %2924 = vmatmul.mubr.msk.f32.vlgmr.msra.gmra.mrb[2].mxu1 %vm197_vm2, %v2002_v36 }
0x2121   :  { %3102 = vmatpush3.bf16.msra.mxu1 %v3586_v12  ;;  %2934 = vmatprep.mubr.msk.f32.mxu1 %vm3279_vm1, %v3280_v4 }
0x2122   :  { %3103 = vmatprep.subr.bf16.mxu1 %v3278_v3 }
0x2125   :  { %3105 = vmatpush3.bf16.msra.mxu1 %v3596_v16 }
0x2126   :  { %3106 = vmatprep.subr.bf16.mxu1 %v3278_v3 }
0x21f3   :  { %v2071_v37 = vpop.f32.mrb[2].mxu1 }
0x21f4   :  { %v3131_v59 = vadd.f32 %v3613_v17, %v2071_v37  ;;  %v2925_v38 = vpop.f32.mrb[3].mxu1 }
0x21f5   :  { %v2404_v38 = vld [vmem:[%s3727_s7 + $0x8] sm:$0xff] }
0x21f6   :  { %3246 = vtanh.f32 %v3131_v59  ;;  %v2535_v26 = vmul.f32 -1.442695, %v3131_v59 }
0x21f8   :  { %3248 = vpow2.f32 %v2535_v26 }
0x2200   :  { %v3247_v28 = vpop.eup %3246 }
0x2201   :  { %2085 = vrot.lane.b32.xlu0 %v3247_v28, %s3281_s0  ;;  %v2405_v28 = vld [vmem:[%s3727_s7 + $0x10] sm:$0xff] }
0x2202   :  { %v3249_v39 = vpop.eup %3248 }
0x2203   :  { %v2079_v40 = vadd.f32 1.0, %v3249_v39  ;;  %v2406_v39 = vld [vmem:[%s3727_s7 + $0x18] sm:$0xff] }
0x2205   :  { %3250 = vrcp.f32 %v2079_v40  ;;  %v3122_v40 = vpack.c.bf16 %v2406_v39, %v2405_v28 }
0x220f   :  { %v3251_v41 = vpop.eup %3250 }
0x2210   :  { %v2083_v44 = vmul.f32 %v3251_v41, %v1992_v29 }
0x2273   :  { %v2086_v9 = vpop.permute.xlu0 %2085 }
0x2274   :  { %v2088_v43 = vmul.f32 %v3251_v41, %v2086_v9 }
0x2276   :  { %2090 = vrot.lane.b32.xlu1 %v2088_v43, %s3281_s0 }
0x22e8   :  { %v2091_v45 = vpop.permute.xlu1 %2090 }
0x22e9   :  { %v2093_v46 = vadd.f32 %v2091_v45, %v2083_v44  ;;  %v2542_v45 = vld [vmem:[%s3728_s8] ss:$0 sm:$0xff] }
0x22eb   :  { %3252 = vtanh.f32 %v2093_v46 }
0x22f5   :  { %v3253_v47 = vpop.eup %3252 }
0x22f6   :  { %2096 = vrot.lane.b32.xlu0 %v3253_v47, %s3281_s0 }
0x2368   :  { %v2097_v48 = vpop.permute.xlu0 %2096 }
0x2369   :  { %v2099_v49 = vmul.f32 %v3251_v41, %v2097_v48 }
0x236b   :  { %2102 = vrot.lane.b32.xlu1 %v2099_v49, %s3282_s4 }
0x23dd   :  { %v2103_v14 = vpop.permute.xlu1 %2102 }
0x23de   :  { %2935 = vmatmul.mubr.msk.f32.vlgmr.msra.gmra.mrb[4].mxu1 %vm197_vm2, %v2103_v14 }
0x23df   :  { %3108 = vmatpush3.bf16.msra.mxu1 %v3586_v12  ;;  %2945 = vmatprep.mubr.msk.f32.mxu1 %vm3279_vm1, %v3280_v4 }
0x23e0   :  { %3109 = vmatprep.subr.bf16.mxu1 %v3278_v3 }
0x23e3   :  { %3111 = vmatpush3.bf16.msra.mxu1 %v3596_v16 }
0x23e4   :  { %3112 = vmatprep.subr.bf16.mxu1 %v3278_v3 }
0x24b1   :  { %v2172_v50 = vpop.f32.mrb[4].mxu1 }
0x24b2   :  { %v3132_v51 = vadd.f32 %v3613_v17, %v2172_v50  ;;  %v2936_v18 = vpop.f32.mrb[5].mxu1 }
0x24b4   :  { %3254 = vtanh.f32 %v3132_v51  ;;  %v2537_v34 = vmul.f32 -1.442695, %v3132_v51 }
0x24b6   :  { %3256 = vpow2.f32 %v2537_v34 }
0x24be   :  { %v3255_v53 = vpop.eup %3254 }
0x24bf   :  { %2186 = vrot.lane.b32.xlu0 %v3255_v53, %s3281_s0 }
0x24c0   :  { %v3257_v55 = vpop.eup %3256 }
0x24c1   :  { %v2180_v56 = vadd.f32 1.0, %v3257_v55 }
0x24c3   :  { %3258 = vrcp.f32 %v2180_v56 }
0x24cd   :  { %v3259_v57 = vpop.eup %3258 }
0x24ce   :  { %v2184_v60 = vmul.f32 %v3259_v57, %v2093_v46 }
0x2531   :  { %v2187_v58 = vpop.permute.xlu0 %2186 }
0x2532   :  { %v2189_v24 = vmul.f32 %v3259_v57, %v2187_v58 }
0x2534   :  { %2191 = vrot.lane.b32.xlu1 %v2189_v24, %s3281_s0 }
0x25a6   :  { %v2192_v61 = vpop.permute.xlu1 %2191 }
0x25a7   :  { %v2194_v52 = vadd.f32 %v2192_v61, %v2184_v60 }
0x25a9   :  { %3260 = vtanh.f32 %v2194_v52 }
0x25b3   :  { %v3261_v62 = vpop.eup %3260 }
0x25b4   :  { %2197 = vrot.lane.b32.xlu0 %v3261_v62, %s3281_s0 }
0x2626   :  { %v2198_v63 = vpop.permute.xlu0 %2197 }
0x2627   :  { %v2200_v0 = vmul.f32 %v3259_v57, %v2198_v63 }
0x2629   :  { %2203 = vrot.lane.b32.xlu1 %v2200_v0, %s3282_s4 }
0x269b   :  { %v2204_v1 = vpop.permute.xlu1 %2203 }
0x269c   :  { %2946 = vmatmul.mubr.msk.f32.vlgmr.msra.gmra.mrb[6].mxu1 %vm197_vm2, %v2204_v1 }
0x269d   :  { %3114 = vmatpush3.bf16.msra.mxu1 %v3586_v12  ;;  %2956 = vmatprep.mubr.msk.f32.mxu1 %vm3279_vm1, %v3280_v4 }
0x269e   :  { %3115 = vmatprep.subr.bf16.mxu1 %v3278_v3 }
0x26a1   :  { %3117 = vmatpush3.bf16.msra.mxu1 %v3596_v16 }
0x276f   :  { %v2273_v2 = vpop.f32.mrb[6].mxu1 }
0x2770   :  { %v3133_v54 = vadd.f32 %v3613_v17, %v2273_v2  ;;  %v2947_v5 = vpop.f32.mrb[7].mxu1 }
0x2772   :  { %3262 = vtanh.f32 %v3133_v54  ;;  %v2539_v6 = vmul.f32 -1.442695, %v3133_v54 }
0x2774   :  { %3264 = vpow2.f32 %v2539_v6 }
0x277c   :  { %v3263_v42 = vpop.eup %3262 }
0x277d   :  { %2287 = vrot.lane.b32.xlu0 %v3263_v42, %s3281_s0 }
0x277e   :  { %v3265_v32 = vpop.eup %3264 }
0x277f   :  { %v2281_v7 = vadd.f32 1.0, %v3265_v32 }
0x2781   :  { %3266 = vrcp.f32 %v2281_v7 }
0x278b   :  { %v3267_v12 = vpop.eup %3266 }
0x278c   :  { %v2285_v10 = vmul.f32 %v3267_v12, %v2194_v52 }
0x27ef   :  { %v2288_v8 = vpop.permute.xlu0 %2287 }
0x27f0   :  { %v2290_v4 = vmul.f32 %v3267_v12, %v2288_v8 }
0x27f2   :  { %2292 = vrot.lane.b32.xlu1 %v2290_v4, %s3281_s0 }
0x2864   :  { %v2293_v16 = vpop.permute.xlu1 %2292 }
0x2865   :  { %v2295_v11 = vadd.f32 %v2293_v16, %v2285_v10 }
0x2867   :  { %3268 = vtanh.f32 %v2295_v11 }
0x2871   :  { %v3269_v13 = vpop.eup %3268 }
0x2872   :  { %2298 = vrot.lane.b32.xlu0 %v3269_v13, %s3281_s0 }
0x28e4   :  { %v2299_v15 = vpop.permute.xlu0 %2298 }
0x28e5   :  { %v2301_v30 = vmul.f32 %v3267_v12, %v2299_v15 }
0x28e7   :  { %2304 = vrot.lane.b32.xlu1 %v2301_v30, %s3282_s4 }
0x2959   :  { %v2305_v19 = vpop.permute.xlu1 %2304 }
0x295a   :  { %2957 = vmatmul.mubr.msk.f32.vlgmr.msra.gmra.mrb[8].mxu1 %vm197_vm2, %v2305_v19 }
0x2a2d   :  { %v2374_v20 = vpop.f32.mrb[8].mxu1 }
0x2a2e   :  { %v3134_v21 = vadd.f32 %v3613_v17, %v2374_v20  ;;  %v2958_v22 = vpop.f32.mrb[9].mxu1  ;;  %v2403_v17 = vld [vmem:[%s3727_s7] sm:$0xff] }
0x2a2f   :  { %v3119_v26 = vpack.c.bf16 %v2404_v38, %v2403_v17 }
0x2a30   :  { %3270 = vtanh.f32 %v3134_v21  ;;  %v2541_v25 = vmul.f32 -1.442695, %v3134_v21 }
0x2a31   :  { %3120 = vmatpush3.bf16.msra.mxu0 %v3119_v26 }
0x2a32   :  { %3272 = vpow2.f32 %v2541_v25  ;;  %3121 = vmatprep.subr.bf16.mxu0 %v3278_v3 }
0x2a35   :  { %3123 = vmatpush3.bf16.msra.mxu0 %v3122_v40 }
0x2a3a   :  { %v3271_v23 = vpop.eup %3270 }
0x2a3b   :  { %2388 = vrot.lane.b32.xlu0 %v3271_v23, %s3281_s0 }
0x2a3c   :  { %v3273_v27 = vpop.eup %3272 }
0x2a3d   :  { %v2382_v29 = vadd.f32 1.0, %v3273_v27 }
0x2a3f   :  { %3274 = vrcp.f32 %v2382_v29 }
0x2a49   :  { %v3275_v31 = vpop.eup %3274 }
0x2a4a   :  { %v2386_v36 = vmul.f32 %v3275_v31, %v2295_v11 }
0x2aad   :  { %v2389_v33 = vpop.permute.xlu0 %2388 }
0x2aae   :  { %v2391_v35 = vmul.f32 %v3275_v31, %v2389_v33 }
0x2ab0   :  { %2393 = vrot.lane.b32.xlu1 %v2391_v35, %s3281_s0 }
0x2b22   :  { %v2394_v37 = vpop.permute.xlu1 %2393 }
0x2b23   :  { %v2396_v59 = vadd.f32 %v2394_v37, %v2386_v36 }
0x2b25   :  { %3276 = vtanh.f32 %v2396_v59 }
0x2b2f   :  { %v3277_v41 = vpop.eup %3276 }
0x2b30   :  { %2399 = vrot.lane.b32.xlu0 %v3277_v41, %s3281_s0 }
0x2ba2   :  { %v2400_v9 = vpop.permute.xlu0 %2399 }
0x2ba3   :  { %v2402_v43 = vmul.f32 %v3275_v31, %v2400_v9 }
0x2ba5   :  { %2415 = vrot.lane.b32.xlu1 %v2402_v43, %s3282_s4 }
0x2c17   :  { %v2416_v44 = vpop.permute.xlu1 %2415 }
0x2c18   :  { %2968 = vmatmul.mubr.msk.f32.vlgmr.msra.gmra.mrb[30].mxu0 %vm197_vm2, %v2416_v44 }
0x2ceb   :  { %v2485_v46 = vpop.f32.mrb[30].mxu0 }
0x2cec   :  { %v2486_v47 = vadd.f32 %v2542_v45, %v2485_v46  ;;  %v2969_v48 = vpop.f32.mrb[31].mxu0 }
0x2cee   :  { %2489 = vst [vmem:[%s3729_s9] sm:$0xff] %v2486_v47 }

</bundles_post_ra>
